<compile_context>
chip_gen: v6e
topology: v6e:2x2x1
jax: 0.10.0
libtpu: 0.0.40
codegen_flags: <defaults>
</compile_context>

<pallas_src>
import functools

import jax
import jax.numpy as jnp
from jax import lax
from jax.experimental import pallas as pl
from jax.experimental.pallas import tpu as pltpu


# ------------------------------ small helpers ------------------------------- #

def _round_up(n, m):
    return ((n + m - 1) // m) * m


def _pad_rows(a, rows):
    b = a.shape[0]
    if b == rows:
        return a
    pad = [(0, rows - b)] + [(0, 0)] * (a.ndim - 1)
    return jnp.pad(a, pad)


def _leaky_relu(x, slope=0.1):
    return jnp.where(x > 0, x, slope * x)


# --------------------------- shared per-step math --------------------------- #

def _a3c_step(x, hx, cx, w_refs, *, stack_frames, hidden, num_actions,
              batch_rows):
    """One A3C_MLP step. x:(S*Bp, D), hx/cx:(Bp, H) are already-loaded values;
    weights are passed as refs so only the needed windows are loaded."""
    S, H, A, Bp = stack_frames, hidden, num_actions, batch_rows
    (w1_ref, w2_ref, w3_ref, w4_ref, fcb_ref,
     wz_ref, bz_ref, wh_ref, bh_ref) = w_refs

    def mm(a, b):
        return jnp.dot(a, b, preferred_element_type=jnp.float32)

    # ---- fc1..fc4 + LeakyReLU(0.1) on all S*Bp rows at once --------------- #
    h = _leaky_relu(mm(x, w1_ref[...]) + fcb_ref[:, 0:256])
    h = _leaky_relu(mm(h, w2_ref[...]) + fcb_ref[:, 256:512])
    h = _leaky_relu(mm(h, w3_ref[...]) + fcb_ref[:, 512:640])
    h = _leaky_relu(mm(h, w4_ref[...]) + fcb_ref[:, 640:768])     # (S*Bp, 128)

    # ---- LSTMCell gate pre-activations, PyTorch order (i, f, g, o) --------- #
    # x.view(B, S*128) @ W_ih is computed as an accumulation over stack frames
    # (rows are in (s, b) order, so frame s is the aligned block
    # h[s*Bp:(s+1)*Bp]) -- no VMEM concat staging, S+1 MXU pushes into one
    # f32 accumulator.
    gates = mm(hx, wz_ref[S * 128:S * 128 + H, :]) + bz_ref[...]   # (Bp, 4H)
    for s in range(S):                          # S is a small static constant
        gates = gates + mm(h[s * Bp:(s + 1) * Bp, :],
                           wz_ref[s * 128:(s + 1) * 128, :])

    i_g = jax.nn.sigmoid(gates[:, 0 * H:1 * H])
    f_g = jax.nn.sigmoid(gates[:, 1 * H:2 * H])
    g_g = jnp.tanh(gates[:, 2 * H:3 * H])
    o_g = jax.nn.sigmoid(gates[:, 3 * H:4 * H])
    c_new = f_g * cx + i_g * g_g
    h_new = o_g * jnp.tanh(c_new)

    # ---- heads: one lane-dense matmul; softsign on the actor lanes only ---- #
    heads = mm(h_new, wh_ref[...]) + bh_ref[...]                   # (Bp, head_w)
    lane = lax.broadcasted_iota(jnp.int32, heads.shape, 1)
    actor_lanes = (lane >= 1) & (lane < 1 + A)
    # Exact divide keeps 1e-5 parity with the reference; heads *
    # pl.reciprocal(1 + |heads|, approx=True) is the EUP micro-opt if a looser
    # tolerance is acceptable.
    heads = jnp.where(actor_lanes, heads / (1.0 + jnp.abs(heads)), heads)
    return heads, h_new, c_new


# ------------------------------ kernels ------------------------------------- #

def a3c_fused_kernel(x_ref, hx_ref, cx_ref,
                     w1_ref, w2_ref, w3_ref, w4_ref, fcb_ref,
                     wz_ref, bz_ref, wh_ref, bh_ref,
                     heads_ref, hx_out_ref, cx_out_ref,
                     *, stack_frames, hidden, num_actions, batch_rows):
    heads, h_new, c_new = _a3c_step(
        x_ref[...], hx_ref[...], cx_ref[...],
        (w1_ref, w2_ref, w3_ref, w4_ref, fcb_ref,
         wz_ref, bz_ref, wh_ref, bh_ref),
        stack_frames=stack_frames, hidden=hidden,
        num_actions=num_actions, batch_rows=batch_rows)
    heads_ref[...] = heads.astype(heads_ref.dtype)
    hx_out_ref[...] = h_new.astype(hx_out_ref.dtype)
    cx_out_ref[...] = c_new.astype(cx_out_ref.dtype)


def a3c_rollout_kernel(x_ref, hx0_ref, cx0_ref,
                       w1_ref, w2_ref, w3_ref, w4_ref, fcb_ref,
                       wz_ref, bz_ref, wh_ref, bh_ref,
                       heads_ref, hx_out_ref, cx_out_ref,
                       hx_scr, cx_scr,
                       *, stack_frames, hidden, num_actions, batch_rows):
    t = pl.program_id(0)

    @pl.when(t == 0)
    def _():
        hx_scr[...] = hx0_ref[...]
        cx_scr[...] = cx0_ref[...]

    heads, h_new, c_new = _a3c_step(
        x_ref[0], hx_scr[...], cx_scr[...],
        (w1_ref, w2_ref, w3_ref, w4_ref, fcb_ref,
         wz_ref, bz_ref, wh_ref, bh_ref),
        stack_frames=stack_frames, hidden=hidden,
        num_actions=num_actions, batch_rows=batch_rows)

    hx_scr[...] = h_new
    cx_scr[...] = c_new
    heads_ref[0] = heads.astype(heads_ref.dtype)

    @pl.when(t == pl.num_programs(0) - 1)
    def _():
        hx_out_ref[...] = hx_scr[...].astype(hx_out_ref.dtype)
        cx_out_ref[...] = cx_scr[...].astype(cx_out_ref.dtype)


# ------------------------------ wrappers ------------------------------------ #

_VMEM = pl.BlockSpec(memory_space=pltpu.MemorySpace.VMEM)


def _resident(shape):
    """Full-array block with a constant index_map -> stays resident in VMEM."""
    nd = len(shape)
    return pl.BlockSpec(shape, lambda *_: (0,) * nd)


@functools.partial(jax.jit, static_argnames=("num_actions",))
def a3c_mlp_forward(packed, x, hx, cx, *, num_actions):
    """Single step (== module.forward). x: (B, S, num_inputs), hx/cx: (B, H).
    Returns (critic, softsign(actor), actor2, hx, cx)."""
    B, S, D = x.shape
    H = hx.shape[-1]
    A = num_actions
    head_w = packed["wh"].shape[-1]
    Bp = _round_up(B, 8)                 # sublane-align the batch dimension

    xp = _pad_rows(x, Bp)                # (Bp, S, D)
    hxp = _pad_rows(hx, Bp)
    cxp = _pad_rows(cx, Bp)
    # (stack_frame, batch) row order: each frame is a contiguous, aligned block.
    xf = jnp.swapaxes(xp, 0, 1).reshape(S * Bp, D)

    kernel = functools.partial(a3c_fused_kernel, stack_frames=S, hidden=H,
                               num_actions=A, batch_rows=Bp)

    heads, hx_new, cx_new = pl.pallas_call(
        kernel,
        out_shape=(
            jax.ShapeDtypeStruct((Bp, head_w), jnp.float32),  # [critic|actor|actor2|pad]
            jax.ShapeDtypeStruct((Bp, H), jnp.float32),       # hx
            jax.ShapeDtypeStruct((Bp, H), jnp.float32),       # cx
        ),
        in_specs=[_VMEM] * 12,
        out_specs=(_VMEM,) * 3,
        input_output_aliases={1: 1, 2: 2},                    # hx/cx in place
    )(xf, hxp, cxp,
      packed["w1"], packed["w2"], packed["w3"], packed["w4"], packed["fcb"],
      packed["wz"], packed["bz"], packed["wh"], packed["bh"])

    critic = heads[:B, 0:1]
    actor = heads[:B, 1:1 + A]
    actor2 = heads[:B, 1 + A:1 + 2 * A]
    return critic, actor, actor2, hx_new[:B], cx_new[:B]


@functools.partial(jax.jit, static_argnames=("num_actions",))
def a3c_mlp_rollout(packed, x_seq, hx, cx, *, num_actions):
    """T forward steps in ONE kernel: weights resident in VMEM, hx/cx carried
    in scratch across the 'arbitrary' time axis, per-step x double-buffered.
    x_seq: (T, B, S, num_inputs).  Returns per-step heads + final (hx, cx)."""
    T, B, S, D = x_seq.shape
    H = hx.shape[-1]
    A = num_actions
    head_w = packed["wh"].shape[-1]
    Bp = _round_up(B, 8)

    xp = jnp.pad(x_seq, ((0, 0), (0, Bp - B), (0, 0), (0, 0)))   # (T, Bp, S, D)
    xf = jnp.swapaxes(xp, 1, 2).reshape(T, S * Bp, D)            # (T, S*Bp, D)
    hxp = _pad_rows(hx, Bp)
    cxp = _pad_rows(cx, Bp)

    kernel = functools.partial(a3c_rollout_kernel, stack_frames=S, hidden=H,
                               num_actions=A, batch_rows=Bp)

    heads_seq, hx_T, cx_T = pl.pallas_call(
        kernel,
        grid=(T,),
        out_shape=(
            jax.ShapeDtypeStruct((T, Bp, head_w), jnp.float32),
            jax.ShapeDtypeStruct((Bp, H), jnp.float32),
            jax.ShapeDtypeStruct((Bp, H), jnp.float32),
        ),
        in_specs=[
            pl.BlockSpec((1, S * Bp, D), lambda t: (t, 0, 0)),   # x_t streamed
            _resident((Bp, H)),                                   # hx0
            _resident((Bp, H)),                                   # cx0
            _resident(packed["w1"].shape), _resident(packed["w2"].shape),
            _resident(packed["w3"].shape), _resident(packed["w4"].shape),
            _resident(packed["fcb"].shape),
            _resident(packed["wz"].shape), _resident(packed["bz"].shape),
            _resident(packed["wh"].shape), _resident(packed["bh"].shape),
        ],
        out_specs=(
            pl.BlockSpec((1, Bp, head_w), lambda t: (t, 0, 0)),
            _resident((Bp, H)),
            _resident((Bp, H)),
        ),
        scratch_shapes=[pltpu.VMEM((Bp, H), jnp.float32),         # hx carry
                        pltpu.VMEM((Bp, H), jnp.float32)],        # cx carry
        compiler_params=pltpu.CompilerParams(
            dimension_semantics=("arbitrary",)),                  # time is sequential
    )(xf, hxp, cxp,
      packed["w1"], packed["w2"], packed["w3"], packed["w4"], packed["fcb"],
      packed["wz"], packed["bz"], packed["wh"], packed["bh"])

    critic = heads_seq[:, :B, 0:1]
    actor = heads_seq[:, :B, 1:1 + A]
    actor2 = heads_seq[:, :B, 1 + A:1 + 2 * A]
    return critic, actor, actor2, hx_T[:B], cx_T[:B]


# ------------------------------ param packing ------------------------------- #

def pack_params(p, weight_dtype=jnp.float32):
    """One-time packing of the canonical (pre-transposed) params into the
    lane-dense layout the fused kernels expect.  Set weight_dtype=jnp.bfloat16
    on v6e/v7x to halve HBM weight traffic (biases stay f32)."""
    H = p["wc"].shape[0]
    A = p["wa"].shape[1]
    head_w = ((1 + 2 * A + 127) // 128) * 128            # lane-dense head slab

    wh = jnp.zeros((H, head_w), jnp.float32)
    wh = (wh.at[:, 0:1].set(p["wc"])
            .at[:, 1:1 + A].set(p["wa"])
            .at[:, 1 + A:1 + 2 * A].set(p["wa2"]))
    bh = jnp.zeros((1, head_w), jnp.float32)
    bh = (bh.at[:, 0:1].set(p["bc"])
            .at[:, 1:1 + A].set(p["ba"])
            .at[:, 1 + A:1 + 2 * A].set(p["ba2"]))

    wd = weight_dtype
    return {
        "w1": p["w1"].astype(wd), "w2": p["w2"].astype(wd),
        "w3": p["w3"].astype(wd), "w4": p["w4"].astype(wd),
        "fcb": jnp.concatenate([p["b1"], p["b2"], p["b3"], p["b4"]], axis=-1),
        "wz": jnp.concatenate([p["wih"], p["whh"]], axis=0).astype(wd),  # (S*128+H, 4H)
        "bz": p["bih"] + p["bhh"],                                        # (1, 4H)
        "wh": wh.astype(wd), "bh": bh,
    }


def init_params(key, num_inputs, stack_frames, hidden_size, num_actions):
    """Deterministic synthetic init mirroring the shapes (and rough spirit) of
    the PyTorch init.  Weights are stored pre-transposed as (in, out)."""
    ks = jax.random.split(key, 12)
    m1 = stack_frames * 128
    lrelu_gain = float(jnp.sqrt(2.0 / (1.0 + 0.01 ** 2)))

    def lin(k, fan_in, fan_out, scale):
        w = jax.random.normal(k, (fan_in, fan_out), jnp.float32)
        return scale * w / jnp.sqrt(float(fan_in))

    return {
        "w1": lin(ks[0], num_inputs, 256, lrelu_gain), "b1": jnp.zeros((1, 256), jnp.float32),
        "w2": lin(ks[1], 256, 256, lrelu_gain),        "b2": jnp.zeros((1, 256), jnp.float32),
        "w3": lin(ks[2], 256, 128, lrelu_gain),        "b3": jnp.zeros((1, 128), jnp.float32),
        "w4": lin(ks[3], 128, 128, lrelu_gain),        "b4": jnp.zeros((1, 128), jnp.float32),
        # LSTMCell(m1, hidden): weight_ih (4H, m1), weight_hh (4H, H) -> transposed
        "wih": lin(ks[4], m1, 4 * hidden_size, 1.0),
        "whh": lin(ks[5], hidden_size, 4 * hidden_size, 1.0),
        # bias_ih: zeros with forget-gate slice (second quarter) set to 1
        "bih": jnp.zeros((1, 4 * hidden_size), jnp.float32)
               .at[0, hidden_size:2 * hidden_size].set(1.0),
        "bhh": jnp.zeros((1, 4 * hidden_size), jnp.float32),
        # heads (norm_col_init-style scale)
        "wc":  lin(ks[6], hidden_size, 1, 1.0),            "bc":  jnp.zeros((1, 1), jnp.float32),
        "wa":  lin(ks[7], hidden_size, num_actions, 0.01), "ba":  jnp.zeros((1, num_actions), jnp.float32),
        "wa2": lin(ks[8], hidden_size, num_actions, 0.01), "ba2": jnp.zeros((1, num_actions), jnp.float32),
    }


# Pure-JAX reference (correctness check against the PyTorch semantics).
def reference_forward(params, x, hx, cx):
    B, S, D = x.shape
    H = hx.shape[-1]
    h = x.reshape(B * S, D)
    for wk, bk in (("w1", "b1"), ("w2", "b2"), ("w3", "b3"), ("w4", "b4")):
        h = h @ params[wk] + params[bk]
        h = jnp.where(h > 0, h, 0.1 * h)
    xl = h.reshape(B, S * 128)
    gates = xl @ params["wih"] + params["bih"] + hx @ params["whh"] + params["bhh"]
    i_g = jax.nn.sigmoid(gates[:, :H])
    f_g = jax.nn.sigmoid(gates[:, H:2 * H])
    g_g = jnp.tanh(gates[:, 2 * H:3 * H])
    o_g = jax.nn.sigmoid(gates[:, 3 * H:])
    c_new = f_g * cx + i_g * g_g
    h_new = o_g * jnp.tanh(c_new)
    critic = h_new @ params["wc"] + params["bc"]
    a = h_new @ params["wa"] + params["ba"]
    actor = a / (1.0 + jnp.abs(a))
    actor2 = h_new @ params["wa2"] + params["ba2"]
    return critic, actor, actor2, h_new, c_new


if __name__ == "__main__":
    import numpy as np

    # Small, forward-consistent shapes.
    B, S, NUM_INPUTS = 2, 2, 16           # batch, stack_frames, num_inputs
    HIDDEN, NUM_ACTIONS = 128, 4          # args.hidden_size, action_space.shape[0]
    T = 4                                 # rollout length for the time-grid kernel

    key = jax.random.PRNGKey(0)
    k_p, k_x, k_h, k_c, k_seq = jax.random.split(key, 5)

    params = init_params(k_p, NUM_INPUTS, S, HIDDEN, NUM_ACTIONS)
    packed = pack_params(params)                       # f32 weights (1e-5 parity)

    x = jax.random.normal(k_x, (B, S, NUM_INPUTS), jnp.float32)
    hx = jax.random.normal(k_h, (B, HIDDEN), jnp.float32) * 0.1
    cx = jax.random.normal(k_c, (B, HIDDEN), jnp.float32) * 0.1

    # --- single-step forward (== module.forward), exact parity ------------- #
    outs = jax.block_until_ready(
        a3c_mlp_forward(packed, x, hx, cx, num_actions=NUM_ACTIONS))
    refs = reference_forward(params, x, hx, cx)
    for o, r in zip(outs, refs):
        np.testing.assert_allclose(np.asarray(o), np.asarray(r),
                                   rtol=1e-5, atol=1e-5)

    # --- T-step rollout in one kernel (weights resident, state carried) ---- #
    x_seq = jax.random.normal(k_seq, (T, B, S, NUM_INPUTS), jnp.float32)
    r_outs = jax.block_until_ready(
        a3c_mlp_rollout(packed, x_seq, hx, cx, num_actions=NUM_ACTIONS))

    h_r, c_r = hx, cx
    crit_l, act_l, act2_l = [], [], []
    for t in range(T):
        c1, a1, a2, h_r, c_r = reference_forward(params, x_seq[t], h_r, c_r)
        crit_l.append(c1); act_l.append(a1); act2_l.append(a2)
    r_refs = (jnp.stack(crit_l), jnp.stack(act_l), jnp.stack(act2_l), h_r, c_r)
    for o, r in zip(r_outs, r_refs):
        np.testing.assert_allclose(np.asarray(o), np.asarray(r),
                                   rtol=1e-4, atol=1e-5)

    # --- bf16-weight packing (v6e/v7x HBM-traffic optimization) ------------ #
    packed_bf16 = pack_params(params, weight_dtype=jnp.bfloat16)
    outs_bf16 = jax.block_until_ready(
        a3c_mlp_forward(packed_bf16, x, hx, cx, num_actions=NUM_ACTIONS))
    for o, r in zip(outs_bf16, refs):
        np.testing.assert_allclose(np.asarray(o), np.asarray(r),
                                   rtol=1e-1, atol=1e-1)

    print("KERNEL_OK")
</pallas_src>

<mosaic_0001>
module attributes {stable_mosaic.version = 11 : i64} {
  func.func @a3c_fused_kernel(%arg0: memref<16x16xf32, #tpu.memory_space<vmem>>, %arg1: memref<8x128xf32, #tpu.memory_space<vmem>>, %arg2: memref<8x128xf32, #tpu.memory_space<vmem>>, %arg3: memref<16x256xf32, #tpu.memory_space<vmem>>, %arg4: memref<256x256xf32, #tpu.memory_space<vmem>>, %arg5: memref<256x128xf32, #tpu.memory_space<vmem>>, %arg6: memref<128x128xf32, #tpu.memory_space<vmem>>, %arg7: memref<1x768xf32, #tpu.memory_space<vmem>>, %arg8: memref<384x512xf32, #tpu.memory_space<vmem>>, %arg9: memref<1x512xf32, #tpu.memory_space<vmem>>, %arg10: memref<128x128xf32, #tpu.memory_space<vmem>>, %arg11: memref<1x128xf32, #tpu.memory_space<vmem>>, %arg12: memref<8x128xf32, #tpu.memory_space<vmem>>, %arg13: memref<8x128xf32, #tpu.memory_space<vmem>>, %arg14: memref<8x128xf32, #tpu.memory_space<vmem>>) attributes {dimension_semantics = [], scalar_prefetch = 0 : i64, scratch_operands = 0 : i64, tpu.core_type = #tpu.core_type<tc>} {
    %c0 = arith.constant 0 : index
    %c0_0 = arith.constant 0 : index
    %0 = vector.load %arg0[%c0, %c0_0] : memref<16x16xf32, #tpu.memory_space<vmem>>, vector<16x16xf32>
    %c0_1 = arith.constant 0 : index
    %c0_2 = arith.constant 0 : index
    %1 = vector.load %arg1[%c0_1, %c0_2] : memref<8x128xf32, #tpu.memory_space<vmem>>, vector<8x128xf32>
    %c0_3 = arith.constant 0 : index
    %c0_4 = arith.constant 0 : index
    %2 = vector.load %arg2[%c0_3, %c0_4] : memref<8x128xf32, #tpu.memory_space<vmem>>, vector<8x128xf32>
    %c0_5 = arith.constant 0 : index
    %c0_6 = arith.constant 0 : index
    %3 = vector.load %arg3[%c0_5, %c0_6] : memref<16x256xf32, #tpu.memory_space<vmem>>, vector<16x256xf32>
    %cst = arith.constant dense<0.000000e+00> : vector<16x256xf32>
    %4 = tpu.matmul %0, %3, %cst {dimension_numbers = #tpu.dot_dimension_numbers<[1], [0], [0], [1], [0, 0, 1, 1], [], []>} : vector<16x16xf32>, vector<16x256xf32>, vector<16x256xf32> -> vector<16x256xf32>
    %c0_7 = arith.constant 0 : index
    %c0_8 = arith.constant 0 : index
    %5 = vector.load %arg7[%c0_7, %c0_8] : memref<1x768xf32, #tpu.memory_space<vmem>>, vector<1x256xf32>
    %6 = vector.broadcast %5 : vector<1x256xf32> to vector<16x256xf32>
    %7 = arith.addf %4, %6 : vector<16x256xf32>
    %cst_9 = arith.constant 0.000000e+00 : f32
    %8 = vector.broadcast %cst_9 : f32 to vector<16x256xf32>
    %9 = arith.cmpf ogt, %7, %8 : vector<16x256xf32>
    %cst_10 = arith.constant 1.000000e-01 : f32
    %10 = vector.broadcast %cst_10 : f32 to vector<16x256xf32>
    %11 = arith.mulf %10, %7 : vector<16x256xf32>
    %12 = arith.select %9, %7, %11 : vector<16x256xi1>, vector<16x256xf32>
    %c0_11 = arith.constant 0 : index
    %c0_12 = arith.constant 0 : index
    %13 = vector.load %arg4[%c0_11, %c0_12] : memref<256x256xf32, #tpu.memory_space<vmem>>, vector<256x256xf32>
    %cst_13 = arith.constant dense<0.000000e+00> : vector<16x256xf32>
    %14 = tpu.matmul %12, %13, %cst_13 {dimension_numbers = #tpu.dot_dimension_numbers<[1], [0], [0], [1], [0, 0, 1, 1], [], []>} : vector<16x256xf32>, vector<256x256xf32>, vector<16x256xf32> -> vector<16x256xf32>
    %c0_14 = arith.constant 0 : index
    %c256 = arith.constant 256 : index
    %15 = vector.load %arg7[%c0_14, %c256] : memref<1x768xf32, #tpu.memory_space<vmem>>, vector<1x256xf32>
    %16 = vector.broadcast %15 : vector<1x256xf32> to vector<16x256xf32>
    %17 = arith.addf %14, %16 : vector<16x256xf32>
    %cst_15 = arith.constant 0.000000e+00 : f32
    %18 = vector.broadcast %cst_15 : f32 to vector<16x256xf32>
    %19 = arith.cmpf ogt, %17, %18 : vector<16x256xf32>
    %cst_16 = arith.constant 1.000000e-01 : f32
    %20 = vector.broadcast %cst_16 : f32 to vector<16x256xf32>
    %21 = arith.mulf %20, %17 : vector<16x256xf32>
    %22 = arith.select %19, %17, %21 : vector<16x256xi1>, vector<16x256xf32>
    %c0_17 = arith.constant 0 : index
    %c0_18 = arith.constant 0 : index
    %23 = vector.load %arg5[%c0_17, %c0_18] : memref<256x128xf32, #tpu.memory_space<vmem>>, vector<256x128xf32>
    %cst_19 = arith.constant dense<0.000000e+00> : vector<16x128xf32>
    %24 = tpu.matmul %22, %23, %cst_19 {dimension_numbers = #tpu.dot_dimension_numbers<[1], [0], [0], [1], [0, 0, 1, 1], [], []>} : vector<16x256xf32>, vector<256x128xf32>, vector<16x128xf32> -> vector<16x128xf32>
    %c0_20 = arith.constant 0 : index
    %c512 = arith.constant 512 : index
    %25 = vector.load %arg7[%c0_20, %c512] : memref<1x768xf32, #tpu.memory_space<vmem>>, vector<1x128xf32>
    %26 = vector.broadcast %25 : vector<1x128xf32> to vector<16x128xf32>
    %27 = arith.addf %24, %26 : vector<16x128xf32>
    %cst_21 = arith.constant 0.000000e+00 : f32
    %28 = vector.broadcast %cst_21 : f32 to vector<16x128xf32>
    %29 = arith.cmpf ogt, %27, %28 : vector<16x128xf32>
    %cst_22 = arith.constant 1.000000e-01 : f32
    %30 = vector.broadcast %cst_22 : f32 to vector<16x128xf32>
    %31 = arith.mulf %30, %27 : vector<16x128xf32>
    %32 = arith.select %29, %27, %31 : vector<16x128xi1>, vector<16x128xf32>
    %c0_23 = arith.constant 0 : index
    %c0_24 = arith.constant 0 : index
    %33 = vector.load %arg6[%c0_23, %c0_24] : memref<128x128xf32, #tpu.memory_space<vmem>>, vector<128x128xf32>
    %cst_25 = arith.constant dense<0.000000e+00> : vector<16x128xf32>
    %34 = tpu.matmul %32, %33, %cst_25 {dimension_numbers = #tpu.dot_dimension_numbers<[1], [0], [0], [1], [0, 0, 1, 1], [], []>} : vector<16x128xf32>, vector<128x128xf32>, vector<16x128xf32> -> vector<16x128xf32>
    %c0_26 = arith.constant 0 : index
    %c640 = arith.constant 640 : index
    %35 = vector.load %arg7[%c0_26, %c640] : memref<1x768xf32, #tpu.memory_space<vmem>>, vector<1x128xf32>
    %36 = vector.broadcast %35 : vector<1x128xf32> to vector<16x128xf32>
    %37 = arith.addf %34, %36 : vector<16x128xf32>
    %cst_27 = arith.constant 0.000000e+00 : f32
    %38 = vector.broadcast %cst_27 : f32 to vector<16x128xf32>
    %39 = arith.cmpf ogt, %37, %38 : vector<16x128xf32>
    %cst_28 = arith.constant 1.000000e-01 : f32
    %40 = vector.broadcast %cst_28 : f32 to vector<16x128xf32>
    %41 = arith.mulf %40, %37 : vector<16x128xf32>
    %42 = arith.select %39, %37, %41 : vector<16x128xi1>, vector<16x128xf32>
    %c256_29 = arith.constant 256 : index
    %c0_30 = arith.constant 0 : index
    %43 = vector.load %arg8[%c256_29, %c0_30] : memref<384x512xf32, #tpu.memory_space<vmem>>, vector<128x512xf32>
    %cst_31 = arith.constant dense<0.000000e+00> : vector<8x512xf32>
    %44 = tpu.matmul %1, %43, %cst_31 {dimension_numbers = #tpu.dot_dimension_numbers<[1], [0], [0], [1], [0, 0, 1, 1], [], []>} : vector<8x128xf32>, vector<128x512xf32>, vector<8x512xf32> -> vector<8x512xf32>
    %c0_32 = arith.constant 0 : index
    %c0_33 = arith.constant 0 : index
    %45 = vector.load %arg9[%c0_32, %c0_33] : memref<1x512xf32, #tpu.memory_space<vmem>>, vector<1x512xf32>
    %46 = vector.broadcast %45 : vector<1x512xf32> to vector<8x512xf32>
    %47 = arith.addf %44, %46 : vector<8x512xf32>
    %48 = vector.extract_strided_slice %42 {offsets = [0, 0], sizes = [8, 128], strides = [1, 1]} : vector<16x128xf32> to vector<8x128xf32>
    %c0_34 = arith.constant 0 : index
    %c0_35 = arith.constant 0 : index
    %49 = vector.load %arg8[%c0_34, %c0_35] : memref<384x512xf32, #tpu.memory_space<vmem>>, vector<128x512xf32>
    %cst_36 = arith.constant dense<0.000000e+00> : vector<8x512xf32>
    %50 = tpu.matmul %48, %49, %cst_36 {dimension_numbers = #tpu.dot_dimension_numbers<[1], [0], [0], [1], [0, 0, 1, 1], [], []>} : vector<8x128xf32>, vector<128x512xf32>, vector<8x512xf32> -> vector<8x512xf32>
    %51 = arith.addf %47, %50 : vector<8x512xf32>
    %52 = vector.extract_strided_slice %42 {offsets = [8, 0], sizes = [8, 128], strides = [1, 1]} : vector<16x128xf32> to vector<8x128xf32>
    %c128 = arith.constant 128 : index
    %c0_37 = arith.constant 0 : index
    %53 = vector.load %arg8[%c128, %c0_37] : memref<384x512xf32, #tpu.memory_space<vmem>>, vector<128x512xf32>
    %cst_38 = arith.constant dense<0.000000e+00> : vector<8x512xf32>
    %54 = tpu.matmul %52, %53, %cst_38 {dimension_numbers = #tpu.dot_dimension_numbers<[1], [0], [0], [1], [0, 0, 1, 1], [], []>} : vector<8x128xf32>, vector<128x512xf32>, vector<8x512xf32> -> vector<8x512xf32>
    %55 = arith.addf %51, %54 : vector<8x512xf32>
    %56 = vector.extract_strided_slice %55 {offsets = [0, 0], sizes = [8, 128], strides = [1, 1]} : vector<8x512xf32> to vector<8x128xf32>
    %57 = arith.negf %56 : vector<8x128xf32>
    %58 = math.exp %57 : vector<8x128xf32>
    %cst_39 = arith.constant 1.000000e+00 : f32
    %59 = vector.broadcast %cst_39 : f32 to vector<8x128xf32>
    %60 = arith.addf %59, %58 : vector<8x128xf32>
    %61 = arith.divf %59, %60 : vector<8x128xf32>
    %62 = vector.extract_strided_slice %55 {offsets = [0, 128], sizes = [8, 128], strides = [1, 1]} : vector<8x512xf32> to vector<8x128xf32>
    %63 = arith.negf %62 : vector<8x128xf32>
    %64 = math.exp %63 : vector<8x128xf32>
    %cst_40 = arith.constant 1.000000e+00 : f32
    %65 = vector.broadcast %cst_40 : f32 to vector<8x128xf32>
    %66 = arith.addf %65, %64 : vector<8x128xf32>
    %67 = arith.divf %65, %66 : vector<8x128xf32>
    %68 = vector.extract_strided_slice %55 {offsets = [0, 256], sizes = [8, 128], strides = [1, 1]} : vector<8x512xf32> to vector<8x128xf32>
    %69 = math.tanh %68 : vector<8x128xf32>
    %70 = vector.extract_strided_slice %55 {offsets = [0, 384], sizes = [8, 128], strides = [1, 1]} : vector<8x512xf32> to vector<8x128xf32>
    %71 = arith.negf %70 : vector<8x128xf32>
    %72 = math.exp %71 : vector<8x128xf32>
    %cst_41 = arith.constant 1.000000e+00 : f32
    %73 = vector.broadcast %cst_41 : f32 to vector<8x128xf32>
    %74 = arith.addf %73, %72 : vector<8x128xf32>
    %75 = arith.divf %73, %74 : vector<8x128xf32>
    %76 = arith.mulf %67, %2 : vector<8x128xf32>
    %77 = arith.mulf %61, %69 : vector<8x128xf32>
    %78 = arith.addf %76, %77 : vector<8x128xf32>
    %79 = math.tanh %78 : vector<8x128xf32>
    %80 = arith.mulf %75, %79 : vector<8x128xf32>
    %c0_42 = arith.constant 0 : index
    %c0_43 = arith.constant 0 : index
    %81 = vector.load %arg10[%c0_42, %c0_43] : memref<128x128xf32, #tpu.memory_space<vmem>>, vector<128x128xf32>
    %cst_44 = arith.constant dense<0.000000e+00> : vector<8x128xf32>
    %82 = tpu.matmul %80, %81, %cst_44 {dimension_numbers = #tpu.dot_dimension_numbers<[1], [0], [0], [1], [0, 0, 1, 1], [], []>} : vector<8x128xf32>, vector<128x128xf32>, vector<8x128xf32> -> vector<8x128xf32>
    %c0_45 = arith.constant 0 : index
    %c0_46 = arith.constant 0 : index
    %83 = vector.load %arg11[%c0_45, %c0_46] : memref<1x128xf32, #tpu.memory_space<vmem>>, vector<1x128xf32>
    %84 = vector.broadcast %83 : vector<1x128xf32> to vector<8x128xf32>
    %85 = arith.addf %82, %84 : vector<8x128xf32>
    %86 = tpu.iota {dimensions = array<i32: 1>} : vector<8x128xi32>
    %c1_i32 = arith.constant 1 : i32
    %87 = vector.broadcast %c1_i32 : i32 to vector<8x128xi32>
    %88 = arith.cmpi sge, %86, %87 : vector<8x128xi32>
    %c5_i32 = arith.constant 5 : i32
    %89 = vector.broadcast %c5_i32 : i32 to vector<8x128xi32>
    %90 = arith.cmpi slt, %86, %89 : vector<8x128xi32>
    %91 = arith.andi %88, %90 : vector<8x128xi1>
    %92 = math.absf %85 : vector<8x128xf32>
    %cst_47 = arith.constant 1.000000e+00 : f32
    %93 = vector.broadcast %cst_47 : f32 to vector<8x128xf32>
    %94 = arith.addf %93, %92 : vector<8x128xf32>
    %95 = arith.divf %85, %94 : vector<8x128xf32>
    %96 = arith.select %91, %95, %85 : vector<8x128xi1>, vector<8x128xf32>
    %c0_48 = arith.constant 0 : index
    %c0_49 = arith.constant 0 : index
    %97 = vector.load %arg12[%c0_48, %c0_49] : memref<8x128xf32, #tpu.memory_space<vmem>>, vector<8x128xf32>
    tpu.vector_store %arg12[%c0_48, %c0_49], %96 {strides = array<i32>} : memref<8x128xf32, #tpu.memory_space<vmem>>, vector<8x128xf32>,
    %c0_50 = arith.constant 0 : index
    %c0_51 = arith.constant 0 : index
    %98 = vector.load %arg13[%c0_50, %c0_51] : memref<8x128xf32, #tpu.memory_space<vmem>>, vector<8x128xf32>
    tpu.vector_store %arg13[%c0_50, %c0_51], %80 {strides = array<i32>} : memref<8x128xf32, #tpu.memory_space<vmem>>, vector<8x128xf32>,
    %c0_52 = arith.constant 0 : index
    %c0_53 = arith.constant 0 : index
    %99 = vector.load %arg14[%c0_52, %c0_53] : memref<8x128xf32, #tpu.memory_space<vmem>>, vector<8x128xf32>
    tpu.vector_store %arg14[%c0_52, %c0_53], %78 {strides = array<i32>} : memref<8x128xf32, #tpu.memory_space<vmem>>, vector<8x128xf32>,
    return
  }
}

</mosaic_0001>

<bundles_post_ra>
// kernel: a3c_mlp_forward.1
= control target key start
LH: loop header
LB: loop body
LE: loop exit
PB: predicated region body
PF: predicated region fallthrough
CT: control target
= control target key end

     0   :  { %20 = vsyncpa [#allocation3], 0  ;;  %s1917_s0 = inlined_call_operand.vmem [shape: f32[16,16], index: 0, kind: input, shape index: {}]   ;;  %s1918_s1 = inlined_call_operand.vmem [shape: f32[8,128], index: 1, kind: input, shape index: {}, may-alias: {1,13}]   ;;  %s1919_s2 = inlined_call_operand.vmem [shape: f32[8,128], index: 2, kind: input, shape index: {}, may-alias: {2,14}]   ;;  %s1920_s3 = inlined_call_operand.vmem [shape: f32[16,256], index: 3, kind: input, shape index: {}]   ;;  %s1921_s4 = inlined_call_operand.hbm [shape: f32[256,256], index: 4, kind: input, shape index: {}]   ;;  %s1922_s5 = inlined_call_operand.hbm [shape: f32[256,128], index: 5, kind: input, shape index: {}]   ;;  %s1923_s6 = inlined_call_operand.hbm [shape: f32[128,128], index: 6, kind: input, shape index: {}]   ;;  %s1924_s7 = inlined_call_operand.vmem [shape: f32[1,768], index: 7, kind: input, shape index: {}]   ;;  %s1925_s8 = inlined_call_operand.hbm [shape: f32[384,512], index: 8, kind: input, shape index: {}]   ;;  %s1926_s9 = inlined_call_operand.vmem [shape: f32[1,512], index: 9, kind: input, shape index: {}]   ;;  %s1927_s10 = inlined_call_operand.hbm [shape: f32[128,128], index: 10, kind: input, shape index: {}]   ;;  %s1928_s11 = inlined_call_operand.vmem [shape: f32[1,128], index: 11, kind: input, shape index: {}]   ;;  %s1929_s12 = inlined_call_operand.vmem [shape: f32[8,128], index: 12, kind: output, shape index: {0}]   ;;  %s1930_s13 = inlined_call_operand.vmem [shape: f32[8,128], index: 13, kind: output, shape index: {1}, may-alias: {1,13}]   ;;  %s1931_s14 = inlined_call_operand.vmem [shape: f32[8,128], index: 14, kind: output, shape index: {2}, may-alias: {2,14}]  }
   0x1   :  { %21 = vsyncpa [#allocation5], 0 }
   0x2   :  { %22 = vsyncpa [#allocation8], 0  ;;  %s1698_s29 = smov [#allocation4]  }
   0x3   :  { %s48_s30 = sshll.u32 %s1698_s29, 4  ;;  %s49_s30 = int_to_ptr.vmem [resolvable:$true] %s48_s30 }
   0x4   :  { %s1600_s15 = scalar_lea.vmem %s49_s30, 4096  ;;  %p1605_p1 = scmp.lt.s32.totalorder %s49_s30, %s49_s30 }
   0x5   :  { %p1601_p0 = scmp.ne.s32.totalorder %s49_s30, %s1600_s15  ;;  %p1606_p2 = scmp.lt.s32.totalorder %s1600_s15, %s1600_s15 }
   0x7   :  { %p1607_p3 = por %p1606_p2, %p1605_p1 }
   0x9   :  { %p1608_p4 = pnand %p1607_p3, %p1601_p0 }
   0xb   :  { %1611 = shalt.err (!%p1608_p4)
}
   0xc   :  { %s1699_s16 = smov 128   ;;  %s1700_s17 = smov 8  }
   0xd   :  { %54 = dma.hbm_to_vmem [thread:$0]  %s1922_s5, 4096, %s49_s30, [#allocation5], %s1699_s16, %s1699_s16, %s1700_s17  }
   0xe   :  { %s1701_s20 = smov [#allocation7]  }
   0xf   :  { %s74_s21 = sshll.u32 %s1701_s20, 4  ;;  %s75_s21 = int_to_ptr.vmem [resolvable:$true] %s74_s21 }
  0x10   :  { %s1620_s22 = scalar_lea.vmem %s75_s21, 24576  ;;  %p1625_p6 = scmp.lt.s32.totalorder %s75_s21, %s75_s21 }
  0x11   :  { %p1621_p5 = scmp.ne.s32.totalorder %s75_s21, %s1620_s22  ;;  %p1626_p7 = scmp.lt.s32.totalorder %s1620_s22, %s1620_s22 }
  0x13   :  { %p1627_p8 = por %p1626_p7, %p1625_p6 }
  0x15   :  { %p1628_p9 = pnand %p1627_p8, %p1621_p5 }
  0x17   :  { %1631 = shalt.err (!%p1628_p9)
}
  0x18   :  { %s1702_s23 = smov 512   ;;  %s1703_s24 = smov 32  }
  0x19   :  { %80 = dma.hbm_to_vmem [thread:$0]  %s1925_s8, 24576, %s75_s21, [#allocation8], %s1702_s23, %s1702_s23, %s1703_s24  }
  0x1a   :  { %s1704_s27 = smov [#allocation2]  }
  0x1b   :  { %s36_s28 = sshll.u32 %s1704_s27, 4  ;;  %s37_s28 = int_to_ptr.vmem [resolvable:$true] %s36_s28 }
  0x1c   :  { %s1640_s5 = scalar_lea.vmem %s37_s28, 8192  ;;  %p1645_p11 = scmp.lt.s32.totalorder %s37_s28, %s37_s28 }
  0x1d   :  { %p1641_p10 = scmp.ne.s32.totalorder %s37_s28, %s1640_s5  ;;  %p1646_p12 = scmp.lt.s32.totalorder %s1640_s5, %s1640_s5 }
  0x1f   :  { %p1647_p13 = por %p1646_p12, %p1645_p11 }
  0x21   :  { %p1648_p0 = pnand %p1647_p13, %p1641_p10 }
  0x23   :  { %1651 = shalt.err (!%p1648_p0)
}
  0x24   :  { %s1705_s29 = smov 256   ;;  %s1706_s30 = smov 16  }
  0x25   :  { %42 = dma.hbm_to_vmem [thread:$0]  %s1921_s4, 8192, %s37_s28, [#allocation3], %s1705_s29, %s1705_s29, %s1706_s30  }
  0x26   :  { %s1707_s19 = smov [#allocation6]   ;;  %s1708_s8 = smov [#allocation9]  }
  0x27   :  { %s60_s20 = sshll.u32 %s1707_s19, 4  ;;  %s88_s21 = sshll.u32 %s1708_s8, 4  ;;  %s61_s20 = int_to_ptr.vmem [resolvable:$true] %s60_s20  ;;  %s89_s21 = int_to_ptr.vmem [resolvable:$true] %s88_s21 }
  0x28   :  { %s1660_s22 = scalar_lea.vmem %s61_s20, 2048  ;;  %p1665_p2 = scmp.lt.s32.totalorder %s61_s20, %s61_s20 }
  0x29   :  { %p1661_p1 = scmp.ne.s32.totalorder %s61_s20, %s1660_s22  ;;  %p1666_p3 = scmp.lt.s32.totalorder %s1660_s22, %s1660_s22 }
  0x2b   :  { %p1667_p4 = por %p1666_p3, %p1665_p2 }
  0x2d   :  { %p1668_p5 = pnand %p1667_p4, %p1661_p1 }
  0x2f   :  { %1671 = shalt.err (!%p1668_p5)
}
  0x30   :  { %66 = dma.hbm_to_vmem [thread:$0]  %s1923_s6, 2048, %s61_s20, [#allocation5], %s1699_s16, %s1699_s16, %s1700_s17  }
  0x31   :  { %s1680_s4 = scalar_lea.vmem %s89_s21, 2048  ;;  %p1685_p7 = scmp.lt.s32.totalorder %s89_s21, %s89_s21 }
  0x32   :  { %p1681_p6 = scmp.ne.s32.totalorder %s89_s21, %s1680_s4  ;;  %p1686_p8 = scmp.lt.s32.totalorder %s1680_s4, %s1680_s4 }
  0x34   :  { %p1687_p9 = por %p1686_p8, %p1685_p7 }
  0x36   :  { %p1688_p10 = pnand %p1687_p9, %p1681_p6 }
  0x38   :  { %1691 = shalt.err (!%p1688_p10)
}
  0x39   :  { %94 = dma.hbm_to_vmem [thread:$0]  %s1927_s10, 2048, %s89_s21, [#allocation8], %s1699_s16, %s1699_s16, %s1700_s17  }
  0x3a   :  { %1692 = dma.done.wait [#allocation3], 8192  }
  0x3b   :  { %1693 = vsyncadd [#allocation3], 4294959104 }
  0x3c   :  { %1694 = dma.done.wait [#allocation5], 6144  }
  0x3d   :  { %1695 = vsyncadd [#allocation5], 4294961152 }
  0x3e   :  { %1696 = dma.done.wait [#allocation8], 26624  }
  0x3f   :  { %1697 = vsyncadd [#allocation8], 4294940672  ;;  %v1709_v0 = vmov 0.0   ;;  %v119_v1 = vld [vmem:[%s1920_s3 + $0x18] sm:$0xff]  ;;  %v118_v2 = vld [vmem:[%s1920_s3 + $0x10] sm:$0xff]  ;;  %vm132_vm0 = vcmask 130048  }
  0x40   :  { %203 = vmatprep.mubr.f32.mxu0 %v1709_v0  ;;  %v117_v3 = vld [vmem:[%s1920_s3 + $0x8] sm:$0xff]  ;;  %167 = vmatprep.subr.mxu0 %v119_v1  ;;  %v116_v4 = vld [vmem:[%s1920_s3] sm:$0xff]  ;;  %v259_v6 = vld [vmem:[#allocation2 + $0xf8] sm:$0xff]  ;;  %vm1710_vm13 = vmmov 0  }
  0x41   :  { %v112_v5 = vld [vmem:[%s1917_s0] sm:$0xff]  ;;  %168 = vmatpush1.msra.mxu0 %v118_v2  ;;  %v258_v7 = vld [vmem:[#allocation2 + $0xf0] sm:$0xff]  ;;  %v257_v8 = vld [vmem:[#allocation2 + $0xe8] sm:$0xff]  ;;  %304 = vmatprep.subr.mxu1 %v259_v6 }
  0x42   :  { %169 = vmatprep.subr.mxu0 %v117_v3  ;;  %v256_v9 = vld [vmem:[#allocation2 + $0xe0] sm:$0xff]  ;;  %305 = vmatpush1.msra.mxu1 %v258_v7  ;;  %v255_v10 = vld [vmem:[#allocation2 + $0xd8] sm:$0xff]  ;;  %v254_v11 = vld [vmem:[#allocation2 + $0xd0] sm:$0xff] }
  0x43   :  { %170 = vmatpush1.msra.mxu0 %v116_v4  ;;  %306 = vmatprep.subr.mxu1 %v257_v8  ;;  %v113_v12 = vld [vmem:[%s1917_s0 + $0x8] sm:$0xff]  ;;  %v252_v14 = vld [vmem:[#allocation2 + $0xc0] sm:$0xff]  ;;  %v251_v15 = vld [vmem:[#allocation2 + $0xb8] sm:$0xff] }
  0x44   :  { %1410 = vmatmul.mubr.msk.f32.vlgmr.msra.gmra.mxu0 %vm132_vm0, %v112_v5  ;;  %307 = vmatpush1.msra.mxu1 %v256_v9  ;;  %v253_v13 = vld [vmem:[#allocation2 + $0xc8] sm:$0xff]  ;;  %v250_v16 = vld [vmem:[#allocation2 + $0xb0] sm:$0xff]  ;;  %v248_v18 = vld [vmem:[#allocation2 + $0xa0] sm:$0xff] }
  0x45   :  { %209 = vmatprep.mubr.f32.mxu0 %v1709_v0  ;;  %308 = vmatprep.subr.mxu1 %v255_v10  ;;  %v249_v17 = vld [vmem:[#allocation2 + $0xa8] sm:$0xff]  ;;  %v247_v19 = vld [vmem:[#allocation2 + $0x98] sm:$0xff]  ;;  %v246_v20 = vld [vmem:[#allocation2 + $0x90] sm:$0xff] }
  0x46   :  { %309 = vmatpush1.msra.mxu1 %v254_v11  ;;  %v245_v21 = vld [vmem:[#allocation2 + $0x88] sm:$0xff]  ;;  %v244_v22 = vld [vmem:[#allocation2 + $0x80] sm:$0xff]  ;;  %v243_v23 = vld [vmem:[#allocation2 + $0x78] sm:$0xff] }
  0x47   :  { %310 = vmatprep.subr.mxu1 %v253_v13  ;;  %v242_v24 = vld [vmem:[#allocation2 + $0x70] sm:$0xff]  ;;  %v241_v25 = vld [vmem:[#allocation2 + $0x68] sm:$0xff]  ;;  %v240_v26 = vld [vmem:[#allocation2 + $0x60] sm:$0xff] }
  0x48   :  { %1411 = vmatmul.mubr.msk.f32.gmra.mxu0 %vm132_vm0, %v113_v12  ;;  %311 = vmatpush1.msra.mxu1 %v252_v14  ;;  %v239_v27 = vld [vmem:[#allocation2 + $0x58] sm:$0xff]  ;;  %v238_v28 = vld [vmem:[#allocation2 + $0x50] sm:$0xff]  ;;  %v237_v29 = vld [vmem:[#allocation2 + $0x48] sm:$0xff] }
  0x49   :  { %312 = vmatprep.subr.mxu1 %v251_v15  ;;  %v236_v30 = vld [vmem:[#allocation2 + $0x40] sm:$0xff]  ;;  %v235_v31 = vld [vmem:[#allocation2 + $0x38] sm:$0xff]  ;;  %v234_v32 = vld [vmem:[#allocation2 + $0x30] sm:$0xff] }
  0x4a   :  { %313 = vmatpush1.msra.mxu1 %v250_v16  ;;  %v233_v33 = vld [vmem:[#allocation2 + $0x28] sm:$0xff]  ;;  %v232_v34 = vld [vmem:[#allocation2 + $0x20] sm:$0xff]  ;;  %v231_v35 = vld [vmem:[#allocation2 + $0x18] sm:$0xff] }
  0x4b   :  { %314 = vmatprep.subr.mxu1 %v249_v17  ;;  %v230_v36 = vld [vmem:[#allocation2 + $0x10] sm:$0xff]  ;;  %v229_v37 = vld [vmem:[#allocation2 + $0x8] sm:$0xff]  ;;  %v228_v38 = vld [vmem:[#allocation2] sm:$0xff] }
  0x4c   :  { %315 = vmatpush1.msra.mxu1 %v248_v18  ;;  %v291_v39 = vld [vmem:[#allocation2 + $0x1f8] sm:$0xff]  ;;  %v290_v40 = vld [vmem:[#allocation2 + $0x1f0] sm:$0xff]  ;;  %v289_v41 = vld [vmem:[#allocation2 + $0x1e8] sm:$0xff] }
  0x4d   :  { %316 = vmatprep.subr.mxu1 %v247_v19  ;;  %v288_v42 = vld [vmem:[#allocation2 + $0x1e0] sm:$0xff]  ;;  %v287_v43 = vld [vmem:[#allocation2 + $0x1d8] sm:$0xff]  ;;  %v286_v44 = vld [vmem:[#allocation2 + $0x1d0] sm:$0xff] }
  0x4e   :  { %317 = vmatpush1.msra.mxu1 %v246_v20  ;;  %v285_v45 = vld [vmem:[#allocation2 + $0x1c8] sm:$0xff]  ;;  %v284_v46 = vld [vmem:[#allocation2 + $0x1c0] sm:$0xff]  ;;  %v283_v47 = vld [vmem:[#allocation2 + $0x1b8] sm:$0xff] }
  0x4f   :  { %318 = vmatprep.subr.mxu1 %v245_v21  ;;  %v282_v48 = vld [vmem:[#allocation2 + $0x1b0] sm:$0xff]  ;;  %v281_v49 = vld [vmem:[#allocation2 + $0x1a8] sm:$0xff]  ;;  %v280_v50 = vld [vmem:[#allocation2 + $0x1a0] sm:$0xff] }
  0x50   :  { %319 = vmatpush1.msra.mxu1 %v244_v22  ;;  %v279_v51 = vld [vmem:[#allocation2 + $0x198] sm:$0xff]  ;;  %v278_v52 = vld [vmem:[#allocation2 + $0x190] sm:$0xff]  ;;  %v277_v53 = vld [vmem:[#allocation2 + $0x188] sm:$0xff] }
  0x51   :  { %320 = vmatprep.subr.mxu1 %v243_v23  ;;  %v276_v54 = vld [vmem:[#allocation2 + $0x180] sm:$0xff]  ;;  %v275_v55 = vld [vmem:[#allocation2 + $0x178] sm:$0xff]  ;;  %v274_v56 = vld [vmem:[#allocation2 + $0x170] sm:$0xff] }
  0x52   :  { %321 = vmatpush1.msra.mxu1 %v242_v24  ;;  %v273_v57 = vld [vmem:[#allocation2 + $0x168] sm:$0xff]  ;;  %v272_v58 = vld [vmem:[#allocation2 + $0x160] sm:$0xff]  ;;  %v271_v59 = vld [vmem:[#allocation2 + $0x158] sm:$0xff] }
  0x53   :  { %322 = vmatprep.subr.mxu1 %v241_v25  ;;  %v270_v60 = vld [vmem:[#allocation2 + $0x150] sm:$0xff]  ;;  %v269_v61 = vld [vmem:[#allocation2 + $0x148] sm:$0xff]  ;;  %v268_v62 = vld [vmem:[#allocation2 + $0x140] sm:$0xff] }
  0x54   :  { %323 = vmatpush1.msra.mxu1 %v240_v26  ;;  %v267_v63 = vld [vmem:[#allocation2 + $0x138] sm:$0xff]  ;;  %v266_v1 = vld [vmem:[#allocation2 + $0x130] sm:$0xff]  ;;  %v265_v2 = vld [vmem:[#allocation2 + $0x128] sm:$0xff] }
  0x55   :  { %324 = vmatprep.subr.mxu1 %v239_v27  ;;  %v264_v3 = vld [vmem:[#allocation2 + $0x120] sm:$0xff]  ;;  %v263_v4 = vld [vmem:[#allocation2 + $0x118] sm:$0xff]  ;;  %v262_v5 = vld [vmem:[#allocation2 + $0x110] sm:$0xff] }
  0x56   :  { %325 = vmatpush1.msra.mxu1 %v238_v28  ;;  %v261_v6 = vld [vmem:[#allocation2 + $0x108] sm:$0xff]  ;;  %v260_v7 = vld [vmem:[#allocation2 + $0x100] sm:$0xff]  ;;  %v424_v8 = vld [vmem:[#allocation4 + $0xf8] sm:$0xff] }
  0x57   :  { %326 = vmatprep.subr.mxu1 %v237_v29  ;;  %v408_v9 = vld [vmem:[#allocation4 + $0x78] sm:$0xff]  ;;  %v423_v10 = vld [vmem:[#allocation4 + $0xf0] sm:$0xff]  ;;  %1418 = vmatprep.subr.mxu0 %v424_v8  ;;  %v422_v12 = vld [vmem:[#allocation4 + $0xe8] sm:$0xff] }
  0x58   :  { %327 = vmatpush1.msra.mxu1 %v236_v30  ;;  %v407_v11 = vld [vmem:[#allocation4 + $0x70] sm:$0xff]  ;;  %1419 = vmatpush3.msra.mxu0 %v408_v9  ;;  %v406_v13 = vld [vmem:[#allocation4 + $0x68] sm:$0xff]  ;;  %v421_v14 = vld [vmem:[#allocation4 + $0xe0] sm:$0xff] }
  0x59   :  { %328 = vmatprep.subr.mxu1 %v235_v31  ;;  %1420 = vmatprep.subr.mxu0 %v423_v10  ;;  %v405_v15 = vld [vmem:[#allocation4 + $0x60] sm:$0xff]  ;;  %v420_v16 = vld [vmem:[#allocation4 + $0xd8] sm:$0xff]  ;;  %v419_v18 = vld [vmem:[#allocation4 + $0xd0] sm:$0xff]  ;;  %v122_v31 = vlaneseq }
  0x5a   :  { %329 = vmatpush1.msra.mxu1 %v234_v32  ;;  %1421 = vmatpush3.msra.mxu0 %v407_v11  ;;  %v404_v17 = vld [vmem:[#allocation4 + $0x58] sm:$0xff]  ;;  %v403_v19 = vld [vmem:[#allocation4 + $0x50] sm:$0xff]  ;;  %v418_v20 = vld [vmem:[#allocation4 + $0xc8] sm:$0xff] }
  0x5b   :  { %330 = vmatprep.subr.mxu1 %v233_v33  ;;  %1422 = vmatprep.subr.mxu0 %v422_v12  ;;  %v402_v21 = vld [vmem:[#allocation4 + $0x48] sm:$0xff]  ;;  %v417_v22 = vld [vmem:[#allocation4 + $0xc0] sm:$0xff]  ;;  %v416_v24 = vld [vmem:[#allocation4 + $0xb8] sm:$0xff]  ;;  %v1833_v32 = vshrl.u32 %v122_v31, 7 }
  0x5c   :  { %331 = vmatpush1.msra.mxu1 %v232_v34  ;;  %1423 = vmatpush3.msra.mxu0 %v406_v13  ;;  %v401_v23 = vld [vmem:[#allocation4 + $0x40] sm:$0xff]  ;;  %v400_v25 = vld [vmem:[#allocation4 + $0x38] sm:$0xff]  ;;  %v415_v26 = vld [vmem:[#allocation4 + $0xb0] sm:$0xff] }
  0x5d   :  { %332 = vmatprep.subr.mxu1 %v231_v35  ;;  %1424 = vmatprep.subr.mxu0 %v421_v14  ;;  %v399_v27 = vld [vmem:[#allocation4 + $0x30] sm:$0xff]  ;;  %v414_v28 = vld [vmem:[#allocation4 + $0xa8] sm:$0xff]  ;;  %v413_v30 = vld [vmem:[#allocation4 + $0xa0] sm:$0xff]  ;;  %v1836_v33 = vsub.s32 0, %v1833_v32  ;;  %v1842_v35 = vsub.s32 1, %v1833_v32 }
  0x5e   :  { %333 = vmatpush1.msra.mxu1 %v230_v36  ;;  %1425 = vmatpush3.msra.mxu0 %v405_v15  ;;  %v398_v29 = vld [vmem:[#allocation4 + $0x28] sm:$0xff]  ;;  %v120_v34 = vld [vmem:[%s1924_s7] sm:$0x3] }
  0x5f   :  { %334 = vmatprep.subr.mxu1 %v229_v37  ;;  %1426 = vmatprep.subr.mxu0 %v420_v16  ;;  %v125_v36 = vrot.slane %v120_v34, %v1836_v33  ;;  %v129_v37 = vrot.slane %v120_v34, %v1842_v35  ;;  %v516_v34 = vld [vmem:[#allocation6 + $0x18] sm:$0xff] }
  0x60   :  { %335 = vmatpush1.msra.mxu1 %v228_v38  ;;  %1427 = vmatpush3.msra.mxu0 %v404_v17  ;;  %v527_v17 = vld [vmem:[#allocation6 + $0x70] sm:$0xff] }
  0x61   :  { %336 = vmatprep.subr.mxu1 %v291_v39  ;;  %1428 = vmatprep.subr.mxu0 %v419_v18 }
  0x62   :  { %337 = vmatpush2.msra.mxu1 %v290_v40  ;;  %1429 = vmatpush3.msra.mxu0 %v403_v19  ;;  %v526_v19 = vld [vmem:[#allocation6 + $0x68] sm:$0xff] }
  0x63   :  { %338 = vmatprep.subr.mxu1 %v289_v41  ;;  %1430 = vmatprep.subr.mxu0 %v418_v20 }
  0x64   :  { %339 = vmatpush2.msra.mxu1 %v288_v42  ;;  %1431 = vmatpush3.msra.mxu0 %v402_v21 }
  0x65   :  { %340 = vmatprep.subr.mxu1 %v287_v43  ;;  %1432 = vmatprep.subr.mxu0 %v417_v22  ;;  %v525_v22 = vld [vmem:[#allocation6 + $0x60] sm:$0xff] }
  0x66   :  { %341 = vmatpush2.msra.mxu1 %v286_v44  ;;  %1433 = vmatpush3.msra.mxu0 %v401_v23  ;;  %v524_v23 = vld [vmem:[#allocation6 + $0x58] sm:$0xff] }
  0x67   :  { %342 = vmatprep.subr.mxu1 %v285_v45  ;;  %1434 = vmatprep.subr.mxu0 %v416_v24  ;;  %v523_v24 = vld [vmem:[#allocation6 + $0x50] sm:$0xff] }
  0x68   :  { %343 = vmatpush2.msra.mxu1 %v284_v46  ;;  %1435 = vmatpush3.msra.mxu0 %v400_v25  ;;  %v522_v25 = vld [vmem:[#allocation6 + $0x48] sm:$0xff] }
  0x69   :  { %344 = vmatprep.subr.mxu1 %v283_v47  ;;  %1436 = vmatprep.subr.mxu0 %v415_v26  ;;  %v521_v26 = vld [vmem:[#allocation6 + $0x40] sm:$0xff] }
  0x6a   :  { %345 = vmatpush2.msra.mxu1 %v282_v48  ;;  %1437 = vmatpush3.msra.mxu0 %v399_v27  ;;  %v520_v27 = vld [vmem:[#allocation6 + $0x38] sm:$0xff] }
  0x6b   :  { %346 = vmatprep.subr.mxu1 %v281_v49  ;;  %1438 = vmatprep.subr.mxu0 %v414_v28  ;;  %v519_v28 = vld [vmem:[#allocation6 + $0x30] sm:$0xff] }
  0x6c   :  { %347 = vmatpush2.msra.mxu1 %v280_v50  ;;  %1439 = vmatpush3.msra.mxu0 %v398_v29  ;;  %v518_v29 = vld [vmem:[#allocation6 + $0x28] sm:$0xff] }
  0x6d   :  { %348 = vmatprep.subr.mxu1 %v279_v51  ;;  %1440 = vmatprep.subr.mxu0 %v413_v30  ;;  %v517_v30 = vld [vmem:[#allocation6 + $0x20] sm:$0xff] }
  0x6e   :  { %349 = vmatpush2.msra.mxu1 %v278_v52 }
  0x6f   :  { %350 = vmatprep.subr.mxu1 %v277_v53 }
  0x70   :  { %351 = vmatpush2.msra.mxu1 %v276_v54  ;;  %v397_v54 = vld [vmem:[#allocation4 + $0x20] sm:$0xff] }
  0x71   :  { %352 = vmatprep.subr.mxu1 %v275_v55  ;;  %1441 = vmatpush3.msra.mxu0 %v397_v54  ;;  %v412_v55 = vld [vmem:[#allocation4 + $0x98] sm:$0xff]  ;;  %v650_v54 = vld [vmem:[#allocation7 + $0x508] sm:$0xff] }
  0x72   :  { %353 = vmatpush2.msra.mxu1 %v274_v56  ;;  %1442 = vmatprep.subr.mxu0 %v412_v55  ;;  %v396_v56 = vld [vmem:[#allocation4 + $0x18] sm:$0xff]  ;;  %v649_v55 = vld [vmem:[#allocation7 + $0x500] sm:$0xff] }
  0x73   :  { %354 = vmatprep.subr.mxu1 %v273_v57  ;;  %1443 = vmatpush3.msra.mxu0 %v396_v56  ;;  %v411_v57 = vld [vmem:[#allocation4 + $0x90] sm:$0xff]  ;;  %v646_v56 = vld [vmem:[#allocation7 + $0x4e8] sm:$0xff] }
  0x74   :  { %355 = vmatpush2.msra.mxu1 %v272_v58  ;;  %1444 = vmatprep.subr.mxu0 %v411_v57  ;;  %v395_v58 = vld [vmem:[#allocation4 + $0x10] sm:$0xff]  ;;  %v645_v57 = vld [vmem:[#allocation7 + $0x4e0] sm:$0xff] }
  0x75   :  { %356 = vmatprep.subr.mxu1 %v271_v59  ;;  %1445 = vmatpush3.msra.mxu0 %v395_v58  ;;  %v410_v59 = vld [vmem:[#allocation4 + $0x88] sm:$0xff] }
  0x76   :  { %357 = vmatpush2.msra.mxu1 %v270_v60  ;;  %1446 = vmatprep.subr.mxu0 %v410_v59  ;;  %v394_v60 = vld [vmem:[#allocation4 + $0x8] sm:$0xff]  ;;  %v641_v59 = vld [vmem:[#allocation7 + $0x4c0] sm:$0xff] }
  0x77   :  { %358 = vmatprep.subr.mxu1 %v269_v61  ;;  %1447 = vmatpush3.msra.mxu0 %v394_v60  ;;  %v409_v61 = vld [vmem:[#allocation4 + $0x80] sm:$0xff]  ;;  %v642_v58 = vld [vmem:[#allocation7 + $0x4c8] sm:$0xff] }
  0x78   :  { %359 = vmatpush2.msra.mxu1 %v268_v62  ;;  %1448 = vmatprep.subr.mxu0 %v409_v61  ;;  %v393_v62 = vld [vmem:[#allocation4] sm:$0xff]  ;;  %v638_v60 = vld [vmem:[#allocation7 + $0x4a8] sm:$0xff] }
  0x79   :  { %360 = vmatprep.subr.mxu1 %v267_v63  ;;  %1449 = vmatpush3.msra.mxu0 %v393_v62  ;;  %v528_v63 = vld [vmem:[#allocation6 + $0x78] sm:$0xff]  ;;  %v637_v61 = vld [vmem:[#allocation7 + $0x4a0] sm:$0xff]  ;;  %v634_v62 = vld [vmem:[#allocation7 + $0x488] sm:$0xff] }
  0x7a   :  { %361 = vmatpush2.msra.mxu1 %v266_v1  ;;  %1491 = vmatprep.subr.mxu0 %v528_v63  ;;  %v292_v1 = vld [vmem:[%s1924_s7 + $0x2] sm:$0x3] }
  0x7b   :  { %362 = vmatprep.subr.mxu1 %v265_v2  ;;  %v297_v2 = vrot.slane %v292_v1, %v1836_v33 }
  0x7c   :  { %363 = vmatpush2.msra.mxu1 %v264_v3  ;;  %v301_v3 = vrot.slane %v292_v1, %v1842_v35  ;;  %v630_v1 = vld [vmem:[#allocation7 + $0x468] sm:$0xff] }
  0x7d   :  { %364 = vmatprep.subr.mxu1 %v263_v4 }
  0x7e   :  { %365 = vmatpush2.msra.mxu1 %v262_v5 }
  0x7f   :  { %366 = vmatprep.subr.mxu1 %v261_v6 }
  0x80   :  { %367 = vmatpush2.msra.mxu1 %v260_v7 }
 0x104   :  { %v205_v38 = vpop.f32.mrf.mxu0 }
 0x105   :  { %v206_v39 = vadd.f32 %v205_v38, %v125_v36  ;;  %v513_v38 = vld [vmem:[#allocation6] sm:$0xff] }
 0x106   :  { %v207_v40 = vpop.f32.mrf.mxu0 }
 0x107   :  { %v208_v41 = vadd.f32 %v207_v40, %v129_v37  ;;  %v220_v42 = vmul.f32 0.1, %v206_v39  ;;  %vm216_vm2 = vcmp.gt.f32.partialorder %v206_v39, 0.0  ;;  %v677_v40 = vld [vmem:[#allocation7 + $0x5e0] sm:$0xff] }
 0x108   :  { %v211_v43 = vpop.f32.mrf.mxu0 }
 0x109   :  { %v212_v44 = vadd.f32 %v211_v43, %v125_v36  ;;  %vm217_vm1 = vcmp.gt.f32.partialorder %v208_v41, 0.0  ;;  %v221_v45 = vmul.f32 0.1, %v208_v41  ;;  %v224_v50 = vsel %vm216_vm2, %v206_v39, %v220_v42  ;;  %v515_v36 = vld [vmem:[#allocation6 + $0x10] sm:$0xff]  ;;  %v678_v39 = vld [vmem:[#allocation7 + $0x5e8] sm:$0xff]  ;;  %v673_v43 = vld [vmem:[#allocation7 + $0x5c0] sm:$0xff] }
 0x10a   :  { %v213_v46 = vpop.f32.mrf.mxu0  ;;  %703 = vmatprep.subr.mxu1 %v678_v39  ;;  %v674_v42 = vld [vmem:[#allocation7 + $0x5c8] sm:$0xff] }
 0x10b   :  { %v214_v47 = vadd.f32 %v213_v46, %v129_v37  ;;  %v225_v48 = vsel %vm217_vm1, %v208_v41, %v221_v45  ;;  %v222_v49 = vmul.f32 0.1, %v212_v44  ;;  %vm218_vm4 = vcmp.gt.f32.partialorder %v212_v44, 0.0  ;;  %v514_v37 = vld [vmem:[#allocation6 + $0x8] sm:$0xff]  ;;  %v680_v41 = vld [vmem:[#allocation7 + $0x5f8] sm:$0xff]  ;;  %v669_v45 = vld [vmem:[#allocation7 + $0x5a0] sm:$0xff] }
 0x10c   :  { %368 = vmatprep.mubr.f32.mxu1 %v225_v48  ;;  %v666_v46 = vld [vmem:[#allocation7 + $0x588] sm:$0xff] }
 0x10d   :  { %v223_v51 = vmul.f32 0.1, %v214_v47  ;;  %369 = vmatmul.mubr.f32.vlgmr.msra.gmra.mxu1 %v224_v50  ;;  %vm219_vm3 = vcmp.gt.f32.partialorder %v214_v47, 0.0  ;;  %v226_v53 = vsel %vm218_vm4, %v212_v44, %v222_v49  ;;  %v670_v44 = vld [vmem:[#allocation7 + $0x5a8] sm:$0xff]  ;;  %v661_v49 = vld [vmem:[#allocation7 + $0x560] sm:$0xff] }
 0x10e   :  { %704 = vmatpush1.msra.mxu1 %v677_v40  ;;  %v662_v48 = vld [vmem:[#allocation7 + $0x568] sm:$0xff]  ;;  %v1412_v40 = vld [vmem:[%s1924_s7 + $0x4] ss:$0 sm:$0xff] }
 0x10f   :  { %v227_v52 = vsel %vm219_vm3, %v214_v47, %v223_v51  ;;  %705 = vmatprep.subr.mxu1 %v674_v42  ;;  %v665_v47 = vld [vmem:[#allocation7 + $0x580] sm:$0xff]  ;;  %v658_v50 = vld [vmem:[#allocation7 + $0x548] sm:$0xff] }
 0x110   :  { %374 = vmatprep.mubr.f32.mxu1 %v227_v52  ;;  %706 = vmatpush1.msra.mxu1 %v673_v43  ;;  %v657_v51 = vld [vmem:[#allocation7 + $0x540] sm:$0xff]  ;;  %v654_v52 = vld [vmem:[#allocation7 + $0x528] sm:$0xff] }
 0x111   :  { %375 = vmatmul.mubr.f32.gmra.mxu1 %v226_v53  ;;  %707 = vmatprep.subr.mxu1 %v670_v44  ;;  %v653_v53 = vld [vmem:[#allocation7 + $0x520] sm:$0xff] }
 0x112   :  { %767 = vmatprep.mubr.f32.mxu1 %v1709_v0  ;;  %708 = vmatpush1.msra.mxu1 %v669_v45 }
 0x113   :  { %709 = vmatprep.subr.mxu1 %v666_v46 }
 0x114   :  { %710 = vmatpush1.msra.mxu1 %v665_v47 }
 0x115   :  { %711 = vmatprep.subr.mxu1 %v662_v48 }
 0x116   :  { %712 = vmatpush1.msra.mxu1 %v661_v49 }
 0x117   :  { %713 = vmatprep.subr.mxu1 %v658_v50 }
 0x118   :  { %714 = vmatpush1.msra.mxu1 %v657_v51  ;;  %v679_v51 = vld [vmem:[#allocation7 + $0x5f0] sm:$0xff] }
 0x119   :  { %715 = vmatprep.subr.mxu1 %v654_v52 }
 0x11a   :  { %716 = vmatpush1.msra.mxu1 %v653_v53  ;;  %v676_v53 = vld [vmem:[#allocation7 + $0x5d8] sm:$0xff] }
 0x11b   :  { %717 = vmatprep.subr.mxu1 %v650_v54  ;;  %v675_v54 = vld [vmem:[#allocation7 + $0x5d0] sm:$0xff] }
 0x11c   :  { %718 = vmatpush1.msra.mxu1 %v649_v55  ;;  %v672_v55 = vld [vmem:[#allocation7 + $0x5b8] sm:$0xff] }
 0x11d   :  { %719 = vmatprep.subr.mxu1 %v646_v56  ;;  %v671_v56 = vld [vmem:[#allocation7 + $0x5b0] sm:$0xff] }
 0x11e   :  { %720 = vmatpush1.msra.mxu1 %v645_v57  ;;  %v668_v57 = vld [vmem:[#allocation7 + $0x598] sm:$0xff] }
 0x11f   :  { %721 = vmatprep.subr.mxu1 %v642_v58  ;;  %v667_v58 = vld [vmem:[#allocation7 + $0x590] sm:$0xff] }
 0x120   :  { %722 = vmatpush1.msra.mxu1 %v641_v59  ;;  %v664_v59 = vld [vmem:[#allocation7 + $0x578] sm:$0xff] }
 0x121   :  { %723 = vmatprep.subr.mxu1 %v638_v60  ;;  %v663_v60 = vld [vmem:[#allocation7 + $0x570] sm:$0xff] }
 0x122   :  { %724 = vmatpush1.msra.mxu1 %v637_v61  ;;  %v660_v61 = vld [vmem:[#allocation7 + $0x558] sm:$0xff] }
 0x123   :  { %725 = vmatprep.subr.mxu1 %v634_v62  ;;  %v659_v62 = vld [vmem:[#allocation7 + $0x550] sm:$0xff] }
 0x1cd   :  { %v370_v4 = vpop.f32.mrf.mxu1 }
 0x1ce   :  { %v371_v5 = vadd.f32 %v370_v4, %v297_v2  ;;  %v625_v4 = vld [vmem:[#allocation7 + $0x440] sm:$0xff] }
 0x1cf   :  { %v372_v6 = vpop.f32.mrf.mxu1 }
 0x1d0   :  { %v373_v7 = vadd.f32 %v372_v6, %v301_v3  ;;  %v385_v8 = vmul.f32 0.1, %v371_v5  ;;  %vm381_vm5 = vcmp.gt.f32.partialorder %v371_v5, 0.0  ;;  %v621_v6 = vld [vmem:[#allocation7 + $0x420] sm:$0xff] }
 0x1d1   :  { %v376_v9 = vpop.f32.mrf.mxu1 }
 0x1d2   :  { %v386_v10 = vmul.f32 0.1, %v373_v7  ;;  %v377_v11 = vadd.f32 %v376_v9, %v297_v2  ;;  %vm382_vm6 = vcmp.gt.f32.partialorder %v373_v7, 0.0  ;;  %v389_v15 = vsel %vm381_vm5, %v371_v5, %v385_v8  ;;  %v629_v2 = vld [vmem:[#allocation7 + $0x460] sm:$0xff]  ;;  %v622_v5 = vld [vmem:[#allocation7 + $0x428] sm:$0xff] }
 0x1d3   :  { %v378_v12 = vpop.f32.mrf.mxu1  ;;  %v617_v8 = vld [vmem:[#allocation7 + $0x400] sm:$0xff] }
 0x1d4   :  { %v379_v13 = vadd.f32 %v378_v12, %v301_v3  ;;  %v390_v14 = vsel %vm382_vm6, %v373_v7, %v386_v10  ;;  %v387_v16 = vmul.f32 0.1, %v377_v11  ;;  %vm383_vm8 = vcmp.gt.f32.partialorder %v377_v11, 0.0  ;;  %v626_v3 = vld [vmem:[#allocation7 + $0x448] sm:$0xff]  ;;  %v1855_v9 = vld [vmem:[%s1918_s1] sm:$0xff] }
 0x1d5   :  { %496 = vmatprep.mubr.f32.mxu0 %v390_v14  ;;  %v618_v7 = vld [vmem:[#allocation7 + $0x408] sm:$0xff] }
 0x1d6   :  { %v388_v18 = vmul.f32 0.1, %v379_v13  ;;  %497 = vmatmul.mubr.f32.vlgmr.msra.gmra.mxu0 %v389_v15  ;;  %vm384_vm7 = vcmp.gt.f32.partialorder %v379_v13, 0.0  ;;  %v391_v21 = vsel %vm383_vm8, %v377_v11, %v387_v16  ;;  %v906_v10 = vld [vmem:[#allocation7 + $0x1e8] sm:$0xff]  ;;  %v905_v11 = vld [vmem:[#allocation7 + $0x1e0] sm:$0xff] }
 0x1d7   :  { %1492 = vmatpush3.msra.mxu0 %v528_v63  ;;  %v633_v63 = vld [vmem:[#allocation7 + $0x480] sm:$0xff]  ;;  %v902_v12 = vld [vmem:[#allocation7 + $0x1c8] sm:$0xff] }
 0x1d8   :  { %v392_v20 = vsel %vm384_vm7, %v379_v13, %v388_v18  ;;  %1493 = vmatprep.subr.mxu0 %v527_v17  ;;  %726 = vmatpush1.msra.mxu1 %v633_v63  ;;  %v901_v13 = vld [vmem:[#allocation7 + $0x1c0] sm:$0xff]  ;;  %v898_v14 = vld [vmem:[#allocation7 + $0x1a8] sm:$0xff]  ;;  %v656_v63 = vld [vmem:[#allocation7 + $0x538] sm:$0xff] }
 0x1d9   :  { %501 = vmatprep.mubr.f32.mxu0 %v392_v20  ;;  %1494 = vmatpush3.msra.mxu0 %v527_v17  ;;  %v897_v15 = vld [vmem:[#allocation7 + $0x1a0] sm:$0xff]  ;;  %v894_v16 = vld [vmem:[#allocation7 + $0x188] sm:$0xff] }
 0x1da   :  { %502 = vmatmul.mubr.f32.gmra.mxu0 %v391_v21  ;;  %1495 = vmatprep.subr.mxu0 %v526_v19  ;;  %v893_v17 = vld [vmem:[#allocation7 + $0x180] sm:$0xff]  ;;  %v890_v18 = vld [vmem:[#allocation7 + $0x168] sm:$0xff] }
 0x1db   :  { %1496 = vmatpush3.msra.mxu0 %v526_v19  ;;  %727 = vmatprep.subr.mxu1 %v630_v1  ;;  %v889_v19 = vld [vmem:[#allocation7 + $0x160] sm:$0xff]  ;;  %v886_v20 = vld [vmem:[#allocation7 + $0x148] sm:$0xff]  ;;  %v655_v1 = vld [vmem:[#allocation7 + $0x530] sm:$0xff] }
 0x1dc   :  { %1497 = vmatprep.subr.mxu0 %v525_v22  ;;  %728 = vmatpush1.msra.mxu1 %v629_v2  ;;  %v885_v21 = vld [vmem:[#allocation7 + $0x140] sm:$0xff]  ;;  %v652_v2 = vld [vmem:[#allocation7 + $0x518] sm:$0xff] }
 0x1dd   :  { %1498 = vmatpush3.msra.mxu0 %v525_v22  ;;  %729 = vmatprep.subr.mxu1 %v626_v3  ;;  %v882_v22 = vld [vmem:[#allocation7 + $0x128] sm:$0xff]  ;;  %v651_v3 = vld [vmem:[#allocation7 + $0x510] sm:$0xff] }
 0x1de   :  { %1499 = vmatprep.subr.mxu0 %v524_v23  ;;  %730 = vmatpush1.msra.mxu1 %v625_v4  ;;  %v648_v4 = vld [vmem:[#allocation7 + $0x4f8] sm:$0xff] }
 0x1df   :  { %1500 = vmatpush3.msra.mxu0 %v524_v23  ;;  %731 = vmatprep.subr.mxu1 %v622_v5  ;;  %v881_v23 = vld [vmem:[#allocation7 + $0x120] sm:$0xff]  ;;  %v647_v5 = vld [vmem:[#allocation7 + $0x4f0] sm:$0xff] }
 0x1e0   :  { %1501 = vmatprep.subr.mxu0 %v523_v24  ;;  %732 = vmatpush1.msra.mxu1 %v621_v6  ;;  %v644_v6 = vld [vmem:[#allocation7 + $0x4d8] sm:$0xff] }
 0x1e1   :  { %1502 = vmatpush3.msra.mxu0 %v523_v24  ;;  %733 = vmatprep.subr.mxu1 %v618_v7  ;;  %v878_v24 = vld [vmem:[#allocation7 + $0x108] sm:$0xff]  ;;  %v643_v7 = vld [vmem:[#allocation7 + $0x4d0] sm:$0xff] }
 0x1e2   :  { %1503 = vmatprep.subr.mxu0 %v522_v25  ;;  %734 = vmatpush1.msra.mxu1 %v617_v8  ;;  %v640_v8 = vld [vmem:[#allocation7 + $0x4b8] sm:$0xff] }
 0x1e3   :  { %1504 = vmatpush3.msra.mxu0 %v522_v25  ;;  %768 = vmatmul.mubr.f32.vlgmr.msra.gmra.mxu1 %v1855_v9  ;;  %v877_v25 = vld [vmem:[#allocation7 + $0x100] sm:$0xff] }
 0x1e4   :  { %1505 = vmatprep.subr.mxu0 %v521_v26  ;;  %909 = vmatprep.subr.mxu1 %v906_v10  ;;  %v639_v10 = vld [vmem:[#allocation7 + $0x4b0] sm:$0xff] }
 0x1e5   :  { %1506 = vmatpush3.msra.mxu0 %v521_v26  ;;  %910 = vmatpush1.msra.mxu1 %v905_v11  ;;  %v874_v26 = vld [vmem:[#allocation7 + $0xe8] sm:$0xff]  ;;  %v636_v11 = vld [vmem:[#allocation7 + $0x498] sm:$0xff] }
 0x1e6   :  { %1507 = vmatprep.subr.mxu0 %v520_v27  ;;  %973 = vmatprep.mubr.f32.mxu1 %v1709_v0 }
 0x1e7   :  { %1508 = vmatpush3.msra.mxu0 %v520_v27  ;;  %911 = vmatprep.subr.mxu1 %v902_v12  ;;  %v873_v27 = vld [vmem:[#allocation7 + $0xe0] sm:$0xff]  ;;  %v635_v12 = vld [vmem:[#allocation7 + $0x490] sm:$0xff] }
 0x1e8   :  { %1509 = vmatprep.subr.mxu0 %v519_v28  ;;  %912 = vmatpush1.msra.mxu1 %v901_v13  ;;  %v632_v13 = vld [vmem:[#allocation7 + $0x478] sm:$0xff] }
 0x1e9   :  { %1510 = vmatpush3.msra.mxu0 %v519_v28  ;;  %913 = vmatprep.subr.mxu1 %v898_v14  ;;  %v870_v28 = vld [vmem:[#allocation7 + $0xc8] sm:$0xff]  ;;  %v631_v14 = vld [vmem:[#allocation7 + $0x470] sm:$0xff] }
 0x1ea   :  { %1511 = vmatprep.subr.mxu0 %v518_v29  ;;  %914 = vmatpush1.msra.mxu1 %v897_v15  ;;  %v628_v15 = vld [vmem:[#allocation7 + $0x458] sm:$0xff] }
 0x1eb   :  { %1512 = vmatpush3.msra.mxu0 %v518_v29  ;;  %915 = vmatprep.subr.mxu1 %v894_v16  ;;  %v869_v29 = vld [vmem:[#allocation7 + $0xc0] sm:$0xff]  ;;  %v627_v16 = vld [vmem:[#allocation7 + $0x450] sm:$0xff] }
 0x1ec   :  { %1513 = vmatprep.subr.mxu0 %v517_v30  ;;  %916 = vmatpush1.msra.mxu1 %v893_v17  ;;  %v624_v17 = vld [vmem:[#allocation7 + $0x438] sm:$0xff] }
 0x1ed   :  { %1514 = vmatpush3.msra.mxu0 %v517_v30  ;;  %917 = vmatprep.subr.mxu1 %v890_v18  ;;  %v866_v30 = vld [vmem:[#allocation7 + $0xa8] sm:$0xff]  ;;  %v623_v18 = vld [vmem:[#allocation7 + $0x430] sm:$0xff] }
 0x1ee   :  { %1515 = vmatprep.subr.mxu0 %v516_v34  ;;  %918 = vmatpush1.msra.mxu1 %v889_v19  ;;  %v620_v19 = vld [vmem:[#allocation7 + $0x418] sm:$0xff] }
 0x1ef   :  { %1516 = vmatpush3.msra.mxu0 %v516_v34  ;;  %919 = vmatprep.subr.mxu1 %v886_v20  ;;  %v865_v34 = vld [vmem:[#allocation7 + $0xa0] sm:$0xff]  ;;  %v619_v20 = vld [vmem:[#allocation7 + $0x410] sm:$0xff] }
 0x1f0   :  { %1517 = vmatprep.subr.mxu0 %v515_v36  ;;  %920 = vmatpush1.msra.mxu1 %v885_v21  ;;  %v908_v21 = vld [vmem:[#allocation7 + $0x1f8] sm:$0xff] }
 0x1f1   :  { %1518 = vmatpush3.msra.mxu0 %v515_v36  ;;  %921 = vmatprep.subr.mxu1 %v882_v22  ;;  %v862_v36 = vld [vmem:[#allocation7 + $0x88] sm:$0xff]  ;;  %v907_v22 = vld [vmem:[#allocation7 + $0x1f0] sm:$0xff] }
 0x1f2   :  { %1519 = vmatprep.subr.mxu0 %v514_v37  ;;  %922 = vmatpush1.msra.mxu1 %v881_v23  ;;  %v904_v23 = vld [vmem:[#allocation7 + $0x1d8] sm:$0xff] }
 0x1f3   :  { %1520 = vmatpush3.msra.mxu0 %v514_v37  ;;  %923 = vmatprep.subr.mxu1 %v878_v24  ;;  %v861_v37 = vld [vmem:[#allocation7 + $0x80] sm:$0xff]  ;;  %v903_v24 = vld [vmem:[#allocation7 + $0x1d0] sm:$0xff] }
 0x1f4   :  { %1521 = vmatprep.subr.mxu0 %v513_v38  ;;  %924 = vmatpush1.msra.mxu1 %v877_v25  ;;  %v900_v25 = vld [vmem:[#allocation7 + $0x1b8] sm:$0xff] }
 0x1f5   :  { %1522 = vmatpush3.msra.mxu0 %v513_v38  ;;  %925 = vmatprep.subr.mxu1 %v874_v26  ;;  %v858_v38 = vld [vmem:[#allocation7 + $0x68] sm:$0xff]  ;;  %v899_v26 = vld [vmem:[#allocation7 + $0x1b0] sm:$0xff] }
 0x1f6   :  { %774 = vmatprep.subr.mxu0 %v680_v41  ;;  %926 = vmatpush1.msra.mxu1 %v873_v27  ;;  %v896_v27 = vld [vmem:[#allocation7 + $0x198] sm:$0xff] }
 0x1f7   :  { %927 = vmatprep.subr.mxu1 %v870_v28  ;;  %v895_v28 = vld [vmem:[#allocation7 + $0x190] sm:$0xff] }
 0x1f8   :  { %928 = vmatpush1.msra.mxu1 %v869_v29  ;;  %v892_v29 = vld [vmem:[#allocation7 + $0x178] sm:$0xff] }
 0x1f9   :  { %929 = vmatprep.subr.mxu1 %v866_v30  ;;  %v891_v30 = vld [vmem:[#allocation7 + $0x170] sm:$0xff] }
 0x1fa   :  { %930 = vmatpush1.msra.mxu1 %v865_v34  ;;  %v888_v34 = vld [vmem:[#allocation7 + $0x158] sm:$0xff] }
 0x1fb   :  { %931 = vmatprep.subr.mxu1 %v862_v36  ;;  %v887_v36 = vld [vmem:[#allocation7 + $0x150] sm:$0xff] }
 0x1fc   :  { %932 = vmatpush1.msra.mxu1 %v861_v37  ;;  %v883_v37 = vld [vmem:[#allocation7 + $0x130] sm:$0xff] }
 0x1fd   :  { %933 = vmatprep.subr.mxu1 %v858_v38  ;;  %v880_v38 = vld [vmem:[#allocation7 + $0x118] sm:$0xff] }
 0x296   :  { %v1450_v39 = vpop.f32.mrf.mxu0 }
 0x298   :  { %v1451_v41 = vpop.f32.mrf.mxu0 }
 0x299   :  { %v1452_v42 = vadd.f32 %v1451_v41, %v1450_v39  ;;  %v879_v39 = vld [vmem:[#allocation7 + $0x110] sm:$0xff] }
 0x29a   :  { %v1453_v43 = vpop.f32.mrf.mxu0  ;;  %v875_v41 = vld [vmem:[#allocation7 + $0xf0] sm:$0xff] }
 0x29b   :  { %v499_v44 = vadd.f32 %v1452_v42, %v1412_v40  ;;  %v872_v42 = vld [vmem:[#allocation7 + $0xd8] sm:$0xff] }
 0x29c   :  { %v1454_v45 = vpop.f32.mrf.mxu0 }
 0x29d   :  { %v1455_v46 = vadd.f32 %v1454_v45, %v1453_v43  ;;  %vm507_vm9 = vcmp.gt.f32.partialorder %v499_v44, 0.0  ;;  %v509_v47 = vmul.f32 0.1, %v499_v44  ;;  %v871_v43 = vld [vmem:[#allocation7 + $0xd0] sm:$0xff] }
 0x29e   :  { %v867_v45 = vld [vmem:[#allocation7 + $0xb0] sm:$0xff] }
 0x29f   :  { %v504_v48 = vadd.f32 %v1455_v46, %v1412_v40  ;;  %v511_v49 = vsel %vm507_vm9, %v499_v44, %v509_v47  ;;  %v876_v40 = vld [vmem:[#allocation7 + $0xf8] sm:$0xff]  ;;  %v863_v47 = vld [vmem:[#allocation7 + $0x90] sm:$0xff] }
 0x2a0   :  { %1523 = vmatprep.mubr.f32.mxu0 %v511_v49  ;;  %v868_v44 = vld [vmem:[#allocation7 + $0xb8] sm:$0xff]  ;;  %v857_v49 = vld [vmem:[#allocation7 + $0x60] sm:$0xff] }
 0x2a1   :  { %vm508_vm10 = vcmp.gt.f32.partialorder %v504_v48, 0.0  ;;  %v510_v50 = vmul.f32 0.1, %v504_v48  ;;  %v864_v46 = vld [vmem:[#allocation7 + $0x98] sm:$0xff]  ;;  %934 = vmatpush1.msra.mxu1 %v857_v49  ;;  %v1081_v49 = vld [vmem:[#allocation7 + $0x2d0] sm:$0xff] }
 0x2a3   :  { %v512_v52 = vsel %vm508_vm10, %v504_v48, %v510_v50  ;;  %v860_v48 = vld [vmem:[#allocation7 + $0x78] sm:$0xff]  ;;  %v859_v50 = vld [vmem:[#allocation7 + $0x70] sm:$0xff] }
 0x2a4   :  { %1524 = vmatmul.mubr.f32.vlgmr.msra.gmra.mxu0 %v512_v52  ;;  %v856_v52 = vld [vmem:[#allocation7 + $0x58] sm:$0xff] }
 0x2a5   :  { %775 = vmatpush1.msra.mxu0 %v679_v51  ;;  %838 = vmatprep.mubr.f32.mxu0 %v1709_v0  ;;  %v854_v51 = vld [vmem:[#allocation7 + $0x48] sm:$0xff] }
 0x2a6   :  { %776 = vmatprep.subr.mxu0 %v676_v53  ;;  %935 = vmatprep.subr.mxu1 %v854_v51  ;;  %v853_v53 = vld [vmem:[#allocation7 + $0x40] sm:$0xff]  ;;  %v1078_v51 = vld [vmem:[#allocation7 + $0x2b8] sm:$0xff] }
 0x2a7   :  { %777 = vmatpush1.msra.mxu0 %v675_v54  ;;  %v855_v54 = vld [vmem:[#allocation7 + $0x50] sm:$0xff]  ;;  %936 = vmatpush1.msra.mxu1 %v853_v53 }
 0x2a8   :  { %778 = vmatprep.subr.mxu0 %v672_v55  ;;  %v850_v55 = vld [vmem:[#allocation7 + $0x28] sm:$0xff]  ;;  %v1077_v53 = vld [vmem:[#allocation7 + $0x2b0] sm:$0xff] }
 0x2a9   :  { %779 = vmatpush1.msra.mxu0 %v671_v56  ;;  %v852_v56 = vld [vmem:[#allocation7 + $0x38] sm:$0xff]  ;;  %937 = vmatprep.subr.mxu1 %v850_v55 }
 0x2aa   :  { %780 = vmatprep.subr.mxu0 %v668_v57  ;;  %v849_v57 = vld [vmem:[#allocation7 + $0x20] sm:$0xff]  ;;  %v1074_v55 = vld [vmem:[#allocation7 + $0x298] sm:$0xff] }
 0x2ab   :  { %781 = vmatpush1.msra.mxu0 %v667_v58  ;;  %v851_v58 = vld [vmem:[#allocation7 + $0x30] sm:$0xff]  ;;  %938 = vmatpush1.msra.mxu1 %v849_v57 }
 0x2ac   :  { %782 = vmatprep.subr.mxu0 %v664_v59  ;;  %v846_v59 = vld [vmem:[#allocation7 + $0x8] sm:$0xff]  ;;  %v1073_v57 = vld [vmem:[#allocation7 + $0x290] sm:$0xff] }
 0x2ad   :  { %783 = vmatpush1.msra.mxu0 %v663_v60  ;;  %v848_v60 = vld [vmem:[#allocation7 + $0x18] sm:$0xff]  ;;  %939 = vmatprep.subr.mxu1 %v846_v59 }
 0x2ae   :  { %784 = vmatprep.subr.mxu0 %v660_v61  ;;  %v845_v61 = vld [vmem:[#allocation7] sm:$0xff]  ;;  %v1070_v59 = vld [vmem:[#allocation7 + $0x278] sm:$0xff] }
 0x2af   :  { %785 = vmatpush1.msra.mxu0 %v659_v62  ;;  %v847_v62 = vld [vmem:[#allocation7 + $0x10] sm:$0xff]  ;;  %940 = vmatpush1.msra.mxu1 %v845_v61 }
 0x2b0   :  { %786 = vmatprep.subr.mxu0 %v656_v63  ;;  %v1116_v63 = vld [vmem:[#allocation7 + $0x3e8] sm:$0xff]  ;;  %v1069_v61 = vld [vmem:[#allocation7 + $0x270] sm:$0xff] }
 0x2b1   :  { %787 = vmatpush1.msra.mxu0 %v655_v1  ;;  %v1118_v1 = vld [vmem:[#allocation7 + $0x3f8] sm:$0xff]  ;;  %1119 = vmatprep.subr.mxu1 %v1116_v63 }
 0x2b2   :  { %788 = vmatprep.subr.mxu0 %v652_v2  ;;  %v1066_v63 = vld [vmem:[#allocation7 + $0x258] sm:$0xff] }
 0x2b3   :  { %789 = vmatpush1.msra.mxu0 %v651_v3  ;;  %v1870_v3 = vld [vmem:[%s1924_s7 + $0x5] ss:$0 sm:$0xff] }
 0x2b4   :  { %790 = vmatprep.subr.mxu0 %v648_v4 }
 0x2b5   :  { %791 = vmatpush1.msra.mxu0 %v647_v5 }
 0x2b6   :  { %792 = vmatprep.subr.mxu0 %v644_v6 }
 0x2b7   :  { %793 = vmatpush1.msra.mxu0 %v643_v7  ;;  %v1115_v7 = vld [vmem:[#allocation7 + $0x3e0] sm:$0xff] }
 0x2b8   :  { %794 = vmatprep.subr.mxu0 %v640_v8  ;;  %v1117_v8 = vld [vmem:[#allocation7 + $0x3f0] sm:$0xff] }
 0x2b9   :  { %795 = vmatpush1.msra.mxu0 %v639_v10 }
 0x2ba   :  { %796 = vmatprep.subr.mxu0 %v636_v11  ;;  %v1112_v11 = vld [vmem:[#allocation7 + $0x3c8] sm:$0xff] }
 0x2bb   :  { %797 = vmatpush1.msra.mxu0 %v635_v12  ;;  %v1114_v12 = vld [vmem:[#allocation7 + $0x3d8] sm:$0xff] }
 0x2bc   :  { %798 = vmatprep.subr.mxu0 %v632_v13  ;;  %v1111_v13 = vld [vmem:[#allocation7 + $0x3c0] sm:$0xff] }
 0x2bd   :  { %799 = vmatpush1.msra.mxu0 %v631_v14  ;;  %v1113_v14 = vld [vmem:[#allocation7 + $0x3d0] sm:$0xff] }
 0x2be   :  { %800 = vmatprep.subr.mxu0 %v628_v15  ;;  %v1108_v15 = vld [vmem:[#allocation7 + $0x3a8] sm:$0xff] }
 0x2bf   :  { %801 = vmatpush1.msra.mxu0 %v627_v16  ;;  %v1110_v16 = vld [vmem:[#allocation7 + $0x3b8] sm:$0xff] }
 0x2c0   :  { %802 = vmatprep.subr.mxu0 %v624_v17  ;;  %v1107_v17 = vld [vmem:[#allocation7 + $0x3a0] sm:$0xff] }
 0x2c1   :  { %803 = vmatpush1.msra.mxu0 %v623_v18  ;;  %v1109_v18 = vld [vmem:[#allocation7 + $0x3b0] sm:$0xff] }
 0x2c2   :  { %804 = vmatprep.subr.mxu0 %v620_v19  ;;  %v1104_v19 = vld [vmem:[#allocation7 + $0x388] sm:$0xff] }
 0x2c3   :  { %805 = vmatpush1.msra.mxu0 %v619_v20  ;;  %v1106_v20 = vld [vmem:[#allocation7 + $0x398] sm:$0xff] }
 0x2c4   :  { %980 = vmatprep.subr.mxu0 %v908_v21  ;;  %839 = vmatmul.mubr.f32.vlgmr.msra.gmra.mxu0 %v1855_v9  ;;  %v884_v9 = vld [vmem:[#allocation7 + $0x138] sm:$0xff]  ;;  %v1103_v21 = vld [vmem:[#allocation7 + $0x380] sm:$0xff] }
 0x2c5   :  { %981 = vmatpush1.msra.mxu0 %v907_v22  ;;  %1044 = vmatprep.mubr.f32.mxu0 %v1709_v0  ;;  %v1105_v22 = vld [vmem:[#allocation7 + $0x390] sm:$0xff] }
 0x2c6   :  { %982 = vmatprep.subr.mxu0 %v904_v23  ;;  %v1100_v23 = vld [vmem:[#allocation7 + $0x368] sm:$0xff] }
 0x2c7   :  { %983 = vmatpush1.msra.mxu0 %v903_v24  ;;  %v1102_v24 = vld [vmem:[#allocation7 + $0x378] sm:$0xff] }
 0x2c8   :  { %984 = vmatprep.subr.mxu0 %v900_v25  ;;  %v1099_v25 = vld [vmem:[#allocation7 + $0x360] sm:$0xff] }
 0x2c9   :  { %985 = vmatpush1.msra.mxu0 %v899_v26  ;;  %v1101_v26 = vld [vmem:[#allocation7 + $0x370] sm:$0xff] }
 0x2ca   :  { %986 = vmatprep.subr.mxu0 %v896_v27  ;;  %v1096_v27 = vld [vmem:[#allocation7 + $0x348] sm:$0xff] }
 0x2cb   :  { %987 = vmatpush1.msra.mxu0 %v895_v28  ;;  %v1098_v28 = vld [vmem:[#allocation7 + $0x358] sm:$0xff] }
 0x2cc   :  { %988 = vmatprep.subr.mxu0 %v892_v29  ;;  %v1095_v29 = vld [vmem:[#allocation7 + $0x340] sm:$0xff] }
 0x2cd   :  { %989 = vmatpush1.msra.mxu0 %v891_v30  ;;  %v1097_v30 = vld [vmem:[#allocation7 + $0x350] sm:$0xff] }
 0x2ce   :  { %990 = vmatprep.subr.mxu0 %v888_v34  ;;  %v1092_v34 = vld [vmem:[#allocation7 + $0x328] sm:$0xff] }
 0x2cf   :  { %991 = vmatpush1.msra.mxu0 %v887_v36  ;;  %v1094_v36 = vld [vmem:[#allocation7 + $0x338] sm:$0xff] }
 0x2d0   :  { %992 = vmatprep.subr.mxu0 %v884_v9  ;;  %v1091_v9 = vld [vmem:[#allocation7 + $0x320] sm:$0xff] }
 0x2d1   :  { %993 = vmatpush1.msra.mxu0 %v883_v37  ;;  %v1093_v37 = vld [vmem:[#allocation7 + $0x330] sm:$0xff] }
 0x2d2   :  { %994 = vmatprep.subr.mxu0 %v880_v38  ;;  %v1088_v38 = vld [vmem:[#allocation7 + $0x308] sm:$0xff] }
 0x2d3   :  { %995 = vmatpush1.msra.mxu0 %v879_v39  ;;  %v1090_v39 = vld [vmem:[#allocation7 + $0x318] sm:$0xff] }
 0x2d4   :  { %996 = vmatprep.subr.mxu0 %v876_v40  ;;  %v1087_v40 = vld [vmem:[#allocation7 + $0x300] sm:$0xff] }
 0x2d5   :  { %997 = vmatpush1.msra.mxu0 %v875_v41  ;;  %v1089_v41 = vld [vmem:[#allocation7 + $0x310] sm:$0xff] }
 0x2d6   :  { %998 = vmatprep.subr.mxu0 %v872_v42  ;;  %v1084_v42 = vld [vmem:[#allocation7 + $0x2e8] sm:$0xff] }
 0x2d7   :  { %999 = vmatpush1.msra.mxu0 %v871_v43  ;;  %v1086_v43 = vld [vmem:[#allocation7 + $0x2f8] sm:$0xff] }
 0x2d8   :  { %1000 = vmatprep.subr.mxu0 %v868_v44  ;;  %v1083_v44 = vld [vmem:[#allocation7 + $0x2e0] sm:$0xff] }
 0x2d9   :  { %1001 = vmatpush1.msra.mxu0 %v867_v45  ;;  %v1085_v45 = vld [vmem:[#allocation7 + $0x2f0] sm:$0xff] }
 0x2da   :  { %1002 = vmatprep.subr.mxu0 %v864_v46  ;;  %v1080_v46 = vld [vmem:[#allocation7 + $0x2c8] sm:$0xff] }
 0x2db   :  { %1003 = vmatpush1.msra.mxu0 %v863_v47  ;;  %v1082_v47 = vld [vmem:[#allocation7 + $0x2d8] sm:$0xff] }
 0x2dc   :  { %1004 = vmatprep.subr.mxu0 %v860_v48  ;;  %v1079_v48 = vld [vmem:[#allocation7 + $0x2c0] sm:$0xff] }
 0x2dd   :  { %1005 = vmatpush1.msra.mxu0 %v859_v50  ;;  %v1076_v50 = vld [vmem:[#allocation7 + $0x2a8] sm:$0xff] }
 0x2de   :  { %1006 = vmatprep.subr.mxu0 %v856_v52  ;;  %v1075_v52 = vld [vmem:[#allocation7 + $0x2a0] sm:$0xff] }
 0x2df   :  { %1007 = vmatpush1.msra.mxu0 %v855_v54  ;;  %v1072_v54 = vld [vmem:[#allocation7 + $0x288] sm:$0xff] }
 0x2e0   :  { %1008 = vmatprep.subr.mxu0 %v852_v56  ;;  %v1071_v56 = vld [vmem:[#allocation7 + $0x280] sm:$0xff] }
 0x2e1   :  { %1009 = vmatpush1.msra.mxu0 %v851_v58  ;;  %v1068_v58 = vld [vmem:[#allocation7 + $0x268] sm:$0xff] }
 0x2e2   :  { %1010 = vmatprep.subr.mxu0 %v848_v60  ;;  %v1067_v60 = vld [vmem:[#allocation7 + $0x260] sm:$0xff] }
 0x2e3   :  { %1011 = vmatpush1.msra.mxu0 %v847_v62  ;;  %v1064_v62 = vld [vmem:[#allocation7 + $0x248] sm:$0xff] }
 0x2e4   :  { %1190 = vmatprep.subr.mxu0 %v1118_v1 }
 0x364   :  { %v1865_v2 = vpop.f32.mrf.mxu0 }
 0x365   :  { %v608_v1 = vadd.f32 %v1865_v2, %v1870_v3  ;;  %v1055_v2 = vld [vmem:[#allocation7 + $0x200] sm:$0xff] }
 0x366   :  { %v602_v4 = vpop.f32.mrf.mxu0 }
 0x367   :  { %v603_v5 = vadd.f32 %v1870_v3, %v602_v4  ;;  %v1063_v4 = vld [vmem:[#allocation7 + $0x240] sm:$0xff]  ;;  %vm612_vm12 = vcmp.gt.f32.partialorder %v608_v1, 0.0  ;;  %v1057_v3 = vld [vmem:[#allocation7 + $0x210] sm:$0xff] }
 0x369   :  { %vm611_vm11 = vcmp.gt.f32.partialorder %v603_v5, 0.0  ;;  %v613_v6 = vmul.f32 0.1, %v603_v5 }
 0x36b   :  { %v615_v10 = vsel %vm611_vm11, %v603_v5, %v613_v6  ;;  %v1065_v5 = vld [vmem:[#allocation7 + $0x250] sm:$0xff]  ;;  %v1060_v6 = vld [vmem:[#allocation7 + $0x228] sm:$0xff] }
 0x36c   :  { %974 = vmatmul.mubr.f32.vlgmr.msra.gmra.mxu1 %v615_v10  ;;  %1045 = vmatmul.mubr.f32.vlgmr.msra.gmra.mxu0 %v615_v10  ;;  %v1061_v10 = vld [vmem:[#allocation7 + $0x230] sm:$0xff] }
 0x36d   :  { %1120 = vmatpush1.msra.mxu1 %v1115_v7  ;;  %1191 = vmatpush1.msra.mxu0 %v1117_v8  ;;  %v1062_v7 = vld [vmem:[#allocation7 + $0x238] sm:$0xff]  ;;  %v1059_v8 = vld [vmem:[#allocation7 + $0x220] sm:$0xff] }
 0x36e   :  { %1121 = vmatprep.subr.mxu1 %v1112_v11  ;;  %1192 = vmatprep.subr.mxu0 %v1114_v12  ;;  %v1056_v11 = vld [vmem:[#allocation7 + $0x208] sm:$0xff]  ;;  %v1058_v12 = vld [vmem:[#allocation7 + $0x218] sm:$0xff] }
 0x36f   :  { %1122 = vmatpush1.msra.mxu1 %v1111_v13  ;;  %1193 = vmatpush1.msra.mxu0 %v1113_v14  ;;  %v614_v13 = vmul.f32 0.1, %v608_v1 }
 0x370   :  { %1123 = vmatprep.subr.mxu1 %v1108_v15  ;;  %1194 = vmatprep.subr.mxu0 %v1110_v16  ;;  %v1304_v15 = vld [vmem:[#allocation9 + $0x78] sm:$0xff]  ;;  %v1303_v16 = vld [vmem:[#allocation9 + $0x70] sm:$0xff] }
 0x371   :  { %1124 = vmatpush1.msra.mxu1 %v1107_v17  ;;  %1195 = vmatpush1.msra.mxu0 %v1109_v18  ;;  %v616_v14 = vsel %vm612_vm12, %v608_v1, %v614_v13  ;;  %v1302_v17 = vld [vmem:[#allocation9 + $0x68] sm:$0xff]  ;;  %v1301_v18 = vld [vmem:[#allocation9 + $0x60] sm:$0xff] }
 0x372   :  { %1125 = vmatprep.subr.mxu1 %v1104_v19  ;;  %1196 = vmatprep.subr.mxu0 %v1106_v20  ;;  %v1300_v19 = vld [vmem:[#allocation9 + $0x58] sm:$0xff]  ;;  %v1299_v20 = vld [vmem:[#allocation9 + $0x50] sm:$0xff] }
 0x373   :  { %1126 = vmatpush1.msra.mxu1 %v1103_v21  ;;  %1197 = vmatpush1.msra.mxu0 %v1105_v22  ;;  %v1298_v21 = vld [vmem:[#allocation9 + $0x48] sm:$0xff]  ;;  %v1297_v22 = vld [vmem:[#allocation9 + $0x40] sm:$0xff] }
 0x374   :  { %1127 = vmatprep.subr.mxu1 %v1100_v23  ;;  %1198 = vmatprep.subr.mxu0 %v1102_v24  ;;  %v1296_v23 = vld [vmem:[#allocation9 + $0x38] sm:$0xff]  ;;  %v1295_v24 = vld [vmem:[#allocation9 + $0x30] sm:$0xff] }
 0x375   :  { %1128 = vmatpush1.msra.mxu1 %v1099_v25  ;;  %1199 = vmatpush1.msra.mxu0 %v1101_v26  ;;  %v1294_v25 = vld [vmem:[#allocation9 + $0x28] sm:$0xff]  ;;  %v1293_v26 = vld [vmem:[#allocation9 + $0x20] sm:$0xff] }
 0x376   :  { %1129 = vmatprep.subr.mxu1 %v1096_v27  ;;  %1200 = vmatprep.subr.mxu0 %v1098_v28  ;;  %v1292_v27 = vld [vmem:[#allocation9 + $0x18] sm:$0xff]  ;;  %v1291_v28 = vld [vmem:[#allocation9 + $0x10] sm:$0xff] }
 0x377   :  { %1130 = vmatpush1.msra.mxu1 %v1095_v29  ;;  %1201 = vmatpush1.msra.mxu0 %v1097_v30  ;;  %v1290_v29 = vld [vmem:[#allocation9 + $0x8] sm:$0xff]  ;;  %v1289_v30 = vld [vmem:[#allocation9] sm:$0xff] }
 0x378   :  { %1131 = vmatprep.subr.mxu1 %v1092_v34  ;;  %1202 = vmatprep.subr.mxu0 %v1094_v36  ;;  %v769_v34 = vpop.f32.mrf.mxu1  ;;  %v681_v36 = vld [vmem:[%s1926_s9] sm:$0xf] }
 0x379   :  { %1132 = vmatpush1.msra.mxu1 %v1091_v9  ;;  %1203 = vmatpush1.msra.mxu0 %v1093_v37  ;;  %v686_v37 = vrot.slane %v681_v36, %v1836_v33 }
 0x37a   :  { %1133 = vmatprep.subr.mxu1 %v1088_v38  ;;  %1204 = vmatprep.subr.mxu0 %v1090_v39  ;;  %v771_v9 = vpop.f32.mrf.mxu1 }
 0x37b   :  { %1134 = vmatpush1.msra.mxu1 %v1087_v40  ;;  %1205 = vmatpush1.msra.mxu0 %v1089_v41  ;;  %v690_v40 = vrot.slane %v681_v36, %v1842_v35  ;;  %v770_v41 = vadd.f32 %v769_v34, %v686_v37  ;;  %v693_v35 = vsub.s32 2, %v1833_v32 }
 0x37c   :  { %1135 = vmatprep.subr.mxu1 %v1084_v42  ;;  %1206 = vmatprep.subr.mxu0 %v1086_v43 }
 0x37d   :  { %1136 = vmatpush1.msra.mxu1 %v1083_v44  ;;  %1207 = vmatpush1.msra.mxu0 %v1085_v45  ;;  %v772_v44 = vadd.f32 %v771_v9, %v690_v40 }
 0x37e   :  { %1137 = vmatprep.subr.mxu1 %v1080_v46  ;;  %1208 = vmatprep.subr.mxu0 %v1082_v47 }
 0x37f   :  { %1138 = vmatpush1.msra.mxu1 %v1079_v48  ;;  %1209 = vmatpush1.msra.mxu0 %v1081_v49 }
 0x380   :  { %1139 = vmatprep.subr.mxu1 %v1076_v50  ;;  %1210 = vmatprep.subr.mxu0 %v1078_v51 }
 0x381   :  { %1140 = vmatpush1.msra.mxu1 %v1075_v52  ;;  %1211 = vmatpush1.msra.mxu0 %v1077_v53 }
 0x382   :  { %1141 = vmatprep.subr.mxu1 %v1072_v54  ;;  %1212 = vmatprep.subr.mxu0 %v1074_v55 }
 0x383   :  { %1142 = vmatpush1.msra.mxu1 %v1071_v56  ;;  %1213 = vmatpush1.msra.mxu0 %v1073_v57 }
 0x384   :  { %1143 = vmatprep.subr.mxu1 %v1068_v58  ;;  %1214 = vmatprep.subr.mxu0 %v1070_v59  ;;  %v840_v38 = vpop.f32.mrf.mxu0  ;;  %v694_v58 = vrot.slane %v681_v36, %v693_v35 }
 0x385   :  { %1144 = vmatpush1.msra.mxu1 %v1067_v60  ;;  %1215 = vmatpush1.msra.mxu0 %v1069_v61 }
 0x386   :  { %1145 = vmatprep.subr.mxu1 %v1064_v62  ;;  %1216 = vmatprep.subr.mxu0 %v1066_v63  ;;  %v842_v42 = vpop.f32.mrf.mxu0  ;;  %v841_v61 = vadd.f32 %v840_v38, %v694_v58 }
 0x387   :  { %1146 = vmatpush1.msra.mxu1 %v1063_v4  ;;  %1217 = vmatpush1.msra.mxu0 %v1065_v5 }
 0x388   :  { %1147 = vmatprep.subr.mxu1 %v1060_v6  ;;  %1218 = vmatprep.subr.mxu0 %v1062_v7 }
 0x389   :  { %1148 = vmatpush1.msra.mxu1 %v1059_v8  ;;  %1219 = vmatpush1.msra.mxu0 %v1061_v10  ;;  %v115_v10 = vld [vmem:[%s1919_s2] sm:$0xff] }
 0x38a   :  { %1149 = vmatprep.subr.mxu1 %v1056_v11  ;;  %1220 = vmatprep.subr.mxu0 %v1058_v12 }
 0x38b   :  { %1150 = vmatpush1.msra.mxu1 %v1055_v2  ;;  %1183 = vmatprep.mubr.f32.mxu1 %v1709_v0 }
 0x38c   :  { %1221 = vmatpush1.msra.mxu0 %v1057_v3  ;;  %1254 = vmatprep.mubr.f32.mxu0 %v1709_v0 }
 0x38d   :  { %1184 = vmatmul.mubr.f32.vlgmr.msra.gmra.mxu1 %v616_v14  ;;  %1255 = vmatmul.mubr.f32.vlgmr.msra.gmra.mxu0 %v616_v14 }
 0x38e   :  { %1526 = vmatprep.subr.mxu1 %v1709_v0  ;;  %1558 = vmatprep.mubr.msk.f32.mxu1 %vm1710_vm13, %v1709_v0 }
 0x38f   :  { %1527 = vmatpush3.msra.mxu1 %v1304_v15 }
 0x390   :  { %1528 = vmatprep.subr.mxu1 %v1709_v0 }
 0x391   :  { %1529 = vmatpush3.msra.mxu1 %v1303_v16 }
 0x392   :  { %1530 = vmatprep.subr.mxu1 %v1709_v0 }
 0x393   :  { %1531 = vmatpush3.msra.mxu1 %v1302_v17 }
 0x394   :  { %1532 = vmatprep.subr.mxu1 %v1709_v0 }
 0x395   :  { %1533 = vmatpush3.msra.mxu1 %v1301_v18  ;;  %v1417_v18 = vld [vmem:[%s1928_s11] ss:$0 sm:$0xff] }
 0x396   :  { %1534 = vmatprep.subr.mxu1 %v1709_v0 }
 0x397   :  { %1535 = vmatpush3.msra.mxu1 %v1300_v19 }
 0x398   :  { %1536 = vmatprep.subr.mxu1 %v1709_v0 }
 0x399   :  { %1537 = vmatpush3.msra.mxu1 %v1299_v20 }
 0x39a   :  { %1538 = vmatprep.subr.mxu1 %v1709_v0 }
 0x39b   :  { %1539 = vmatpush3.msra.mxu1 %v1298_v21 }
 0x39c   :  { %1540 = vmatprep.subr.mxu1 %v1709_v0 }
 0x39d   :  { %1541 = vmatpush3.msra.mxu1 %v1297_v22 }
 0x39e   :  { %1542 = vmatprep.subr.mxu1 %v1709_v0 }
 0x39f   :  { %1543 = vmatpush3.msra.mxu1 %v1296_v23 }
 0x3a0   :  { %1544 = vmatprep.subr.mxu1 %v1709_v0 }
 0x3a1   :  { %1545 = vmatpush3.msra.mxu1 %v1295_v24  ;;  %v1383_v24 = vand.u32 127, %v122_v31 }
 0x3a2   :  { %1546 = vmatprep.subr.mxu1 %v1709_v0 }
 0x3a3   :  { %1547 = vmatpush3.msra.mxu1 %v1294_v25  ;;  %vm1384_vm14 = vcmp.ge.s32.totalorder %v1383_v24, 1  ;;  %vm1385_vm15 = vcmp.lt.s32.totalorder %v1383_v24, 5 }
 0x3a4   :  { %1548 = vmatprep.subr.mxu1 %v1709_v0  ;;  %vm1386_vm0 = vmand %vm1384_vm14, %vm1385_vm15 }
 0x3a5   :  { %1549 = vmatpush3.msra.mxu1 %v1293_v26 }
 0x3a6   :  { %1550 = vmatprep.subr.mxu1 %v1709_v0 }
 0x3a7   :  { %1551 = vmatpush3.msra.mxu1 %v1292_v27 }
 0x3a8   :  { %1552 = vmatprep.subr.mxu1 %v1709_v0 }
 0x3a9   :  { %1553 = vmatpush3.msra.mxu1 %v1291_v28 }
 0x3aa   :  { %1554 = vmatprep.subr.mxu1 %v1709_v0 }
 0x3ab   :  { %1555 = vmatpush3.msra.mxu1 %v1290_v29 }
 0x3ac   :  { %1556 = vmatprep.subr.mxu1 %v1709_v0  ;;  %v697_v0 = vsub.s32 3, %v1833_v32 }
 0x3ad   :  { %1557 = vmatpush3.msra.mxu1 %v1289_v30 }
 0x3ae   :  { %v698_v33 = vrot.slane %v681_v36, %v697_v0 }
 0x3b0   :  { %v843_v56 = vadd.f32 %v842_v42, %v698_v33 }
 0x42c   :  { %v975_v39 = vpop.f32.mrf.mxu1  ;;  %v1046_v46 = vpop.f32.mrf.mxu0 }
 0x42d   :  { %v1051_v45 = vadd.f32 %v975_v39, %v770_v41  ;;  %v1053_v62 = vadd.f32 %v1046_v46, %v841_v61 }
 0x42e   :  { %v977_v43 = vpop.f32.mrf.mxu1  ;;  %v1048_v51 = vpop.f32.mrf.mxu0 }
 0x42f   :  { %v1052_v48 = vadd.f32 %v977_v43, %v772_v44  ;;  %v1054_v59 = vadd.f32 %v1048_v51, %v843_v56 }
 0x44d   :  { %v1185_v47 = vpop.f32.mrf.mxu1  ;;  %v1256_v54 = vpop.f32.mrf.mxu0 }
 0x44e   :  { %v1261_v49 = vadd.f32 %v1185_v47, %v1051_v45  ;;  %v1263_v4 = vadd.f32 %v1256_v54, %v1053_v62 }
 0x44f   :  { %v1187_v50 = vpop.f32.mrf.mxu1  ;;  %v1258_v57 = vpop.f32.mrf.mxu0 }
 0x450   :  { %v1414_v52 = vmul.f32 -1.442695, %v1261_v49  ;;  %v1262_v53 = vadd.f32 %v1187_v50, %v1052_v48  ;;  %v1264_v60 = vadd.f32 %v1258_v57, %v1054_v59 }
 0x452   :  { %1574 = vpow2.f32 %v1414_v52  ;;  %v1415_v55 = vmul.f32 -1.442695, %v1262_v53  ;;  %v1416_v63 = vmul.f32 -1.442695, %v1264_v60 }
 0x454   :  { %1576 = vpow2.f32 %v1415_v55 }
 0x455   :  { %1578 = vpow2.f32 %v1416_v63 }
 0x45f   :  { %v1575_v1 = vpop.eup %1574 }
 0x460   :  { %v1268_v5 = vadd.f32 1.0, %v1575_v1 }
 0x461   :  { %v1577_v6 = vpop.eup %1576 }
 0x462   :  { %1580 = vrcp.f32 %v1268_v5  ;;  %v1274_v7 = vadd.f32 1.0, %v1577_v6  ;;  %v1579_v8 = vpop.eup %1578 }
 0x463   :  { %1582 = vtanh.f32 %v1263_v4  ;;  %v1281_v13 = vadd.f32 1.0, %v1579_v8 }
 0x464   :  { %1584 = vrcp.f32 %v1274_v7 }
 0x465   :  { %1586 = vrcp.f32 %v1281_v13 }
 0x46f   :  { %v1581_v32 = vpop.eup %1580 }
 0x470   :  { %v1583_v11 = vpop.eup %1582 }
 0x471   :  { %v1585_v12 = vpop.eup %1584  ;;  %v1285_v2 = vmul.f32 %v1583_v11, %v1581_v32 }
 0x472   :  { %v1284_v3 = vmul.f32 %v1585_v12, %v115_v10  ;;  %v1587_v15 = vpop.eup %1586 }
 0x474   :  { %v1286_v14 = vadd.f32 %v1285_v2, %v1284_v3 }
 0x476   :  { %1394 = vst [vmem:[%s1931_s14] sm:$0xff] %v1286_v14  ;;  %1588 = vtanh.f32 %v1286_v14 }
 0x483   :  { %v1589_v16 = vpop.eup %1588 }
 0x484   :  { %v1288_v17 = vmul.f32 %v1589_v16, %v1587_v15 }
 0x486   :  { %1559 = vmatmul.mubr.f32.vlgmr.msra.gmra.mxu1 %v1288_v17  ;;  %1393 = vst [vmem:[%s1930_s13] sm:$0xff] %v1288_v17 }
 0x546   :  { %v1378_v19 = vpop.f32.mrf.mxu1 }
 0x547   :  { %v1379_v20 = vadd.f32 %v1417_v18, %v1378_v19 }
 0x548   :  { %v1560_v21 = vpop.f32.mrf.mxu1 }
 0x549   :  { %v1387_v22 = vand.u32 2147483647, %v1379_v20 }
 0x54b   :  { %v1388_v23 = vadd.f32 1.0, %v1387_v22 }
 0x54d   :  { %1590 = vrcp.f32 %v1388_v23 }
 0x55a   :  { %v1591_v25 = vpop.eup %1590 }
 0x55b   :  { %v1390_v26 = vmul.f32 %v1591_v25, %v1379_v20 }
 0x55d   :  { %v1391_v27 = vsel %vm1386_vm0, %v1390_v26, %v1379_v20 }
 0x55e   :  { %1392 = vst [vmem:[%s1929_s12] sm:$0xff] %v1391_v27 }
 0x55f   :  { %1407 = vsyncpa [#allocation3], 1 }
 0x560   :  { %1408 = vsyncpa [#allocation5], 1 }
 0x561   :  { %1409 = vsyncpa [#allocation8], 1 }

</bundles_post_ra>
